<compile_context>
chip_gen: v7x
topology: tpu7x:2x2x1
jax: 0.10.0
libtpu: 0.0.40
codegen_flags: <defaults>
</compile_context>

<pallas_src>
import functools

import jax
import jax.numpy as jnp
from jax import lax
from jax.experimental import pallas as pl
from jax.experimental.pallas import tpu as pltpu


def _rollout_encoder_kernel(xr_ref,
                            w1_ref, b1_ref, w2_ref, b2_ref,
                            wx_ref, wr_ref, whh_ref, bl_ref,
                            c_out_ref,
                            h_scr, pg_scr,
                            *, batch, obs_dim, t_block, hidden, unroll):
    H = hidden
    B = batch          # already padded to a multiple of 8
    D = obs_dim

    # h/c carries persist across grid steps along T: zero only once.
    # (c carry lives directly in the resident output block.)
    @pl.when(pl.program_id(0) == 0)
    def _():
        h_scr[...] = jnp.zeros_like(h_scr)
        c_out_ref[...] = jnp.zeros_like(c_out_ref)

    # ---- time-parallel precompute for this block of timesteps --------------
    # xr rows are time-major / batch-inner: row t*B + b <-> (t, b); last
    # column is the reward.
    xr = xr_ref[...]                       # (t_block*B, D+1) f32
    x = xr[:, :D]
    r = xr[:, D:]                          # (t_block*B, 1)

    mm_dt = w1_ref.dtype                   # f32 or bf16 (MXU operands only)
    z1 = jnp.dot(x.astype(mm_dt), w1_ref[...],
                 preferred_element_type=jnp.float32) + b1_ref[...]
    z1 = jnp.maximum(z1, 0.0)
    feats = jnp.dot(z1.astype(w2_ref.dtype), w2_ref[...],
                    preferred_element_type=jnp.float32) + b2_ref[...]
    feats = jnp.maximum(feats, 0.0)        # (t_block*B, 64) f32

    # pre_gates = feats @ Wx + r * Wr + (b_ih + b_hh)   (gate order [i,f,o,g])
    pg_scr[...] = (jnp.dot(feats.astype(wx_ref.dtype), wx_ref[...],
                           preferred_element_type=jnp.float32)
                   + r * wr_ref[...]
                   + bl_ref[...])          # (t_block*B, 4H) f32

    # ---- serial LSTM recurrence: only h @ Whh + activations remain ---------
    def step(t, carry):
        row0 = pl.multiple_of(t * B, 8)                    # 8-aligned (B % 8 == 0)
        pre_t = pg_scr[pl.ds(row0, B), :]                  # (B, 4H) rows of step t
        gates = (jnp.dot(h_scr[...], whh_ref[...],
                         preferred_element_type=jnp.float32)
                 + pre_t)                                  # (B, 4H)
        sig = jax.nn.sigmoid(gates[:, :3 * H])             # [ i | f | o ] contiguous
        g_g = jnp.tanh(gates[:, 3 * H:])                   # g
        i_g = sig[:, 0:H]
        f_g = sig[:, H:2 * H]
        o_g = sig[:, 2 * H:3 * H]
        c_new = f_g * c_out_ref[...] + i_g * g_g
        c_out_ref[...] = c_new
        h_scr[...] = o_g * jnp.tanh(c_new)
        return carry

    lax.fori_loop(0, t_block, step, 0, unroll=unroll)
    # Output block index is constant over the grid -> the last grid step's
    # resident value is the final c_n; no extra copy needed.


def _pick_t_block(T, B_pad, D, H, budget_bytes=12 << 20):
    """Largest divisor of T whose per-block VMEM footprint (double-buffered
    input slab + pre-gate scratch) fits the budget."""
    def est(tb):
        rows = tb * B_pad
        return rows * (D + 1) * 4 * 2 + rows * 4 * H * 4
    best = 1
    for d in range(1, T + 1):
        if T % d == 0 and est(d) <= budget_bytes:
            best = d
    return best


def prepare_kernel_params(params):
    """One-time gate-column permutation [i,f,g,o] -> [i,f,o,g] so the kernel
    applies sigmoid to one contiguous 3H slice and tanh to one H slice."""
    H = params["whh"].shape[0]
    perm = jnp.concatenate([jnp.arange(0, 2 * H),
                            jnp.arange(3 * H, 4 * H),
                            jnp.arange(2 * H, 3 * H)])
    out = dict(params)
    for k in ("wx", "wr", "whh", "bl"):
        out[k] = params[k][:, perm]
    return out


@functools.partial(jax.jit, static_argnames=("t_block", "use_bf16"))
def rollout_encoder_forward(state, reward, kparams, *, t_block=None,
                            use_bf16=False):
    """state: (T, B, D) f32, reward: (T, B, 1) f32, kparams from
    prepare_kernel_params -> c_n: (B, H) f32."""
    T, B, D = state.shape
    H = kparams["whh"].shape[0]
    B_pad = max(8, ((B + 7) // 8) * 8)

    if t_block is None:
        t_block = _pick_t_block(T, B_pad, D, H)
    assert T % t_block == 0, "t_block must divide T"
    n_blocks = T // t_block

    # Adaptive unroll: cap by vreg footprint of one (B_pad, 4H) f32 gate tile.
    gate_vregs = max(1, ((B_pad + 7) // 8) * ((4 * H + 127) // 128))
    unroll = True if t_block <= 4 else int(max(1, min(8, 16 // gate_vregs)))

    # Merge reward into the state slab (single lane-dense DMA per block) and
    # pad batch to the 8-sublane granule; padded rows are zero and evolve
    # independently, so they never touch real rows.
    xr = jnp.concatenate([state, reward], axis=2)           # (T, B, D+1)
    if B_pad != B:
        xr = jnp.pad(xr, ((0, 0), (0, B_pad - B), (0, 0)))
    xr2d = xr.reshape(T * B_pad, D + 1)                     # row t*B_pad + b

    mm_dt = jnp.bfloat16 if use_bf16 else jnp.float32
    weights = (kparams["w1"].astype(mm_dt), kparams["b1"],
               kparams["w2"].astype(mm_dt), kparams["b2"],
               kparams["wx"].astype(mm_dt), kparams["wr"],
               kparams["whh"], kparams["bl"])

    kernel = functools.partial(_rollout_encoder_kernel,
                               batch=B_pad, obs_dim=D, t_block=t_block,
                               hidden=H, unroll=unroll)

    in_specs = ([pl.BlockSpec((t_block * B_pad, D + 1), lambda t: (t, 0))]
                + [pl.BlockSpec(w.shape, lambda t: (0, 0)) for w in weights])

    # VMEM budget estimate -> explicit scoped-VMEM limit (safe on v5e 16 MiB
    # default and v7x 64 MiB physical).
    rows = t_block * B_pad
    weight_bytes = sum(int(w.size) * w.dtype.itemsize for w in weights)
    est = (rows * (D + 1) * 4 * 2          # double-buffered input block
           + rows * 4 * H * 4              # pre-gate scratch
           + 2 * B_pad * H * 4             # h scratch + resident output
           + 2 * weight_bytes)             # weights (headroom for buffering)
    vmem_limit = int(min(32 << 20, max(16 << 20, 2 * est)))

    c_pad = pl.pallas_call(
        kernel,
        out_shape=jax.ShapeDtypeStruct((B_pad, H), jnp.float32),
        grid=(n_blocks,),
        in_specs=in_specs,
        out_specs=pl.BlockSpec((B_pad, H), lambda t: (0, 0)),
        scratch_shapes=[pltpu.VMEM((B_pad, H), jnp.float32),                 # h_t
                        pltpu.VMEM((t_block * B_pad, 4 * H), jnp.float32)],  # pre-gates
        compiler_params=pltpu.CompilerParams(
            dimension_semantics=("arbitrary",),    # carried recurrence over T
            vmem_limit_bytes=vmem_limit),
    )(xr2d, *weights)
    return c_pad[:B]


def reference_forward(state, reward, params):
    """Pure-JAX reference mirroring the PyTorch module exactly ([i,f,g,o])."""
    T, B, D = state.shape
    H = params["whh"].shape[0]
    x = state.reshape(T * B, D)
    z1 = jnp.maximum(x @ params["w1"] + params["b1"], 0.0)
    feats = jnp.maximum(z1 @ params["w2"] + params["b2"], 0.0).reshape(T, B, -1)
    rnn_in = jnp.concatenate([feats, reward], axis=2)              # (T, B, 65)
    w_ih = jnp.concatenate([params["wx"], params["wr"]], axis=0)   # (65, 4H)

    def step(carry, x_t):
        h, c = carry
        gates = x_t @ w_ih + h @ params["whh"] + params["bl"]
        i = jax.nn.sigmoid(gates[:, :H])
        f = jax.nn.sigmoid(gates[:, H:2 * H])
        g = jnp.tanh(gates[:, 2 * H:3 * H])
        o = jax.nn.sigmoid(gates[:, 3 * H:4 * H])
        c = f * c + i * g
        h = o * jnp.tanh(c)
        return (h, c), None

    h0 = jnp.zeros((B, H), jnp.float32)
    c0 = jnp.zeros((B, H), jnp.float32)
    (_, c_n), _ = lax.scan(step, (h0, c0), rnn_in)
    return c_n


def make_params(key, obs_dim, hidden):
    D, H = obs_dim, hidden
    ks = jax.random.split(key, 9)

    def uni(k, shape, fan):
        b = 1.0 / jnp.sqrt(jnp.float32(fan))
        return jax.random.uniform(k, shape, jnp.float32, -b, b)

    return {
        # features: Linear(D,64) -> ReLU -> Linear(64,64) -> ReLU
        "w1": uni(ks[0], (D, 64), D),
        "b1": uni(ks[1], (1, 64), D),
        "w2": uni(ks[2], (64, 64), 64),
        "b2": uni(ks[3], (1, 64), 64),
        # LSTM(input=65, hidden=H); W_ih split into feature part (64) + reward part (1)
        "wx": uni(ks[4], (64, 4 * H), H),
        "wr": uni(ks[5], (1, 4 * H), H),
        "whh": uni(ks[6], (H, 4 * H), H),
        "bl": uni(ks[7], (1, 4 * H), H) + uni(ks[8], (1, 4 * H), H),  # b_ih + b_hh
    }


if __name__ == "__main__":
    T, B, D, H = 8, 2, 4, 32   # num_steps, batch, obs_dim[0], hidden_size

    key = jax.random.PRNGKey(0)
    k_par, k_state, k_rew = jax.random.split(key, 3)
    params = make_params(k_par, D, H)
    kparams = prepare_kernel_params(params)   # one-time gate permutation

    state = jax.random.normal(k_state, (T, B, D), jnp.float32)
    reward = jax.random.normal(k_rew, (T, B, 1), jnp.float32)

    c_ref = jax.block_until_ready(reference_forward(state, reward, params))

    # Default f32 path: auto t_block (=T here -> grid=(1,)).
    c_kernel = jax.block_until_ready(
        rollout_encoder_forward(state, reward, kparams))
    assert c_kernel.shape == (B, H)
    assert jnp.allclose(c_kernel, c_ref, atol=1e-5, rtol=1e-5), (
        f"max abs err {jnp.max(jnp.abs(c_kernel - c_ref))}")

    # Multi-block path (grid=(2,)): exercises the carried h/c across grid steps.
    c_kernel2 = jax.block_until_ready(
        rollout_encoder_forward(state, reward, kparams, t_block=4))
    assert jnp.allclose(c_kernel2, c_ref, atol=1e-5, rtol=1e-5), (
        f"max abs err {jnp.max(jnp.abs(c_kernel2 - c_ref))}")

    # bf16 MXU operands for the time-parallel matmul chain (v6e/v7x lever).
    c_bf16 = jax.block_until_ready(
        rollout_encoder_forward(state, reward, kparams, use_bf16=True))
    assert jnp.allclose(c_bf16, c_ref, atol=5e-2, rtol=5e-2), (
        f"bf16 max abs err {jnp.max(jnp.abs(c_bf16 - c_ref))}")

    print("KERNEL_OK")
</pallas_src>

<mosaic_0001>
module attributes {stable_mosaic.version = 11 : i64} {
  func.func @_rollout_encoder_kernel(%arg0: i32, %arg1: memref<64x5xf32, #tpu.memory_space<vmem>>, %arg2: memref<4x64xf32, #tpu.memory_space<vmem>>, %arg3: memref<1x64xf32, #tpu.memory_space<vmem>>, %arg4: memref<64x64xf32, #tpu.memory_space<vmem>>, %arg5: memref<1x64xf32, #tpu.memory_space<vmem>>, %arg6: memref<64x128xf32, #tpu.memory_space<vmem>>, %arg7: memref<1x128xf32, #tpu.memory_space<vmem>>, %arg8: memref<32x128xf32, #tpu.memory_space<vmem>>, %arg9: memref<1x128xf32, #tpu.memory_space<vmem>>, %arg10: memref<8x32xf32, #tpu.memory_space<vmem>>, %arg11: memref<8x32xf32, #tpu.memory_space<vmem>>, %arg12: memref<64x128xf32, #tpu.memory_space<vmem>>) attributes {dimension_semantics = [#tpu.dimension_semantics<arbitrary>], iteration_bounds = array<i64: 1>, scalar_prefetch = 0 : i64, scratch_operands = 2 : i64, tpu.core_type = #tpu.core_type<tc>, window_params = [{transform_indices = @transform_0, window_bounds = array<i64: 64, 5>}, {pipeline_mode = #tpu.pipeline_mode<synchronous>, transform_indices = @transform_1, window_bounds = array<i64: 4, 64>}, {pipeline_mode = #tpu.pipeline_mode<synchronous>, transform_indices = @transform_2, window_bounds = array<i64: 1, 64>}, {pipeline_mode = #tpu.pipeline_mode<synchronous>, transform_indices = @transform_3, window_bounds = array<i64: 64, 64>}, {pipeline_mode = #tpu.pipeline_mode<synchronous>, transform_indices = @transform_4, window_bounds = array<i64: 1, 64>}, {pipeline_mode = #tpu.pipeline_mode<synchronous>, transform_indices = @transform_5, window_bounds = array<i64: 64, 128>}, {pipeline_mode = #tpu.pipeline_mode<synchronous>, transform_indices = @transform_6, window_bounds = array<i64: 1, 128>}, {pipeline_mode = #tpu.pipeline_mode<synchronous>, transform_indices = @transform_7, window_bounds = array<i64: 32, 128>}, {pipeline_mode = #tpu.pipeline_mode<synchronous>, transform_indices = @transform_8, window_bounds = array<i64: 1, 128>}, {pipeline_mode = #tpu.pipeline_mode<synchronous>, transform_indices = @transform_9, window_bounds = array<i64: 8, 32>}]} {
    %c0_i32 = arith.constant 0 : i32
    %0 = arith.cmpi eq, %arg0, %c0_i32 : i32
    %1 = arith.extui %0 : i1 to i32
    %c0_i32_0 = arith.constant 0 : i32
    %2 = arith.cmpi ne, %1, %c0_i32_0 : i32
    scf.if %2 {
      %cst_135 = arith.constant 0.000000e+00 : f32
      %247 = vector.broadcast %cst_135 : f32 to vector<8x32xf32>
      %c0_136 = arith.constant 0 : index
      %c0_137 = arith.constant 0 : index
      %248 = vector.load %arg11[%c0_136, %c0_137] : memref<8x32xf32, #tpu.memory_space<vmem>>, vector<8x32xf32>
      tpu.vector_store %arg11[%c0_136, %c0_137], %247 {strides = array<i32>} : memref<8x32xf32, #tpu.memory_space<vmem>>, vector<8x32xf32>,
      %cst_138 = arith.constant 0.000000e+00 : f32
      %249 = vector.broadcast %cst_138 : f32 to vector<8x32xf32>
      %c0_139 = arith.constant 0 : index
      %c0_140 = arith.constant 0 : index
      %250 = vector.load %arg10[%c0_139, %c0_140] : memref<8x32xf32, #tpu.memory_space<vmem>>, vector<8x32xf32>
      tpu.vector_store %arg10[%c0_139, %c0_140], %249 {strides = array<i32>} : memref<8x32xf32, #tpu.memory_space<vmem>>, vector<8x32xf32>,
    } else {
    }
    %c0 = arith.constant 0 : index
    %c0_1 = arith.constant 0 : index
    %3 = vector.load %arg1[%c0, %c0_1] : memref<64x5xf32, #tpu.memory_space<vmem>>, vector<64x5xf32>
    %4 = vector.extract_strided_slice %3 {offsets = [0, 0], sizes = [64, 4], strides = [1, 1]} : vector<64x5xf32> to vector<64x4xf32>
    %5 = vector.extract_strided_slice %3 {offsets = [0, 4], sizes = [64, 1], strides = [1, 1]} : vector<64x5xf32> to vector<64x1xf32>
    %c0_2 = arith.constant 0 : index
    %c0_3 = arith.constant 0 : index
    %6 = vector.load %arg2[%c0_2, %c0_3] : memref<4x64xf32, #tpu.memory_space<vmem>>, vector<4x64xf32>
    %cst = arith.constant dense<0.000000e+00> : vector<64x64xf32>
    %7 = tpu.matmul %4, %6, %cst {dimension_numbers = #tpu.dot_dimension_numbers<[1], [0], [0], [1], [0, 0, 1, 1], [], []>} : vector<64x4xf32>, vector<4x64xf32>, vector<64x64xf32> -> vector<64x64xf32>
    %c0_4 = arith.constant 0 : index
    %c0_5 = arith.constant 0 : index
    %8 = vector.load %arg3[%c0_4, %c0_5] : memref<1x64xf32, #tpu.memory_space<vmem>>, vector<1x64xf32>
    %9 = vector.broadcast %8 : vector<1x64xf32> to vector<64x64xf32>
    %10 = arith.addf %7, %9 : vector<64x64xf32>
    %cst_6 = arith.constant 0.000000e+00 : f32
    %11 = vector.broadcast %cst_6 : f32 to vector<64x64xf32>
    %12 = arith.maximumf %10, %11 : vector<64x64xf32>
    %c0_7 = arith.constant 0 : index
    %c0_8 = arith.constant 0 : index
    %13 = vector.load %arg4[%c0_7, %c0_8] : memref<64x64xf32, #tpu.memory_space<vmem>>, vector<64x64xf32>
    %cst_9 = arith.constant dense<0.000000e+00> : vector<64x64xf32>
    %14 = tpu.matmul %12, %13, %cst_9 {dimension_numbers = #tpu.dot_dimension_numbers<[1], [0], [0], [1], [0, 0, 1, 1], [], []>} : vector<64x64xf32>, vector<64x64xf32>, vector<64x64xf32> -> vector<64x64xf32>
    %c0_10 = arith.constant 0 : index
    %c0_11 = arith.constant 0 : index
    %15 = vector.load %arg5[%c0_10, %c0_11] : memref<1x64xf32, #tpu.memory_space<vmem>>, vector<1x64xf32>
    %16 = vector.broadcast %15 : vector<1x64xf32> to vector<64x64xf32>
    %17 = arith.addf %14, %16 : vector<64x64xf32>
    %cst_12 = arith.constant 0.000000e+00 : f32
    %18 = vector.broadcast %cst_12 : f32 to vector<64x64xf32>
    %19 = arith.maximumf %17, %18 : vector<64x64xf32>
    %c0_13 = arith.constant 0 : index
    %c0_14 = arith.constant 0 : index
    %20 = vector.load %arg6[%c0_13, %c0_14] : memref<64x128xf32, #tpu.memory_space<vmem>>, vector<64x128xf32>
    %cst_15 = arith.constant dense<0.000000e+00> : vector<64x128xf32>
    %21 = tpu.matmul %19, %20, %cst_15 {dimension_numbers = #tpu.dot_dimension_numbers<[1], [0], [0], [1], [0, 0, 1, 1], [], []>} : vector<64x64xf32>, vector<64x128xf32>, vector<64x128xf32> -> vector<64x128xf32>
    %c0_16 = arith.constant 0 : index
    %c0_17 = arith.constant 0 : index
    %22 = vector.load %arg7[%c0_16, %c0_17] : memref<1x128xf32, #tpu.memory_space<vmem>>, vector<1x128xf32>
    %23 = vector.broadcast %5 : vector<64x1xf32> to vector<64x128xf32>
    %24 = vector.broadcast %22 : vector<1x128xf32> to vector<64x128xf32>
    %25 = arith.mulf %23, %24 : vector<64x128xf32>
    %26 = arith.addf %21, %25 : vector<64x128xf32>
    %c0_18 = arith.constant 0 : index
    %c0_19 = arith.constant 0 : index
    %27 = vector.load %arg9[%c0_18, %c0_19] : memref<1x128xf32, #tpu.memory_space<vmem>>, vector<1x128xf32>
    %28 = vector.broadcast %27 : vector<1x128xf32> to vector<64x128xf32>
    %29 = arith.addf %26, %28 : vector<64x128xf32>
    %c0_20 = arith.constant 0 : index
    %c0_21 = arith.constant 0 : index
    %30 = vector.load %arg12[%c0_20, %c0_21] : memref<64x128xf32, #tpu.memory_space<vmem>>, vector<64x128xf32>
    tpu.vector_store %arg12[%c0_20, %c0_21], %29 {strides = array<i32>} : memref<64x128xf32, #tpu.memory_space<vmem>>, vector<64x128xf32>,
    %c0_i32_22 = arith.constant 0 : i32
    %c8_i32 = arith.constant 8 : i32
    %31 = arith.muli %c0_i32_22, %c8_i32 : i32
    %32 = tpu.assume_multiple %31, 8 : i32
    %33 = arith.index_cast %32 : i32 to index
    %c0_23 = arith.constant 0 : index
    %34 = vector.load %arg12[%33, %c0_23] : memref<64x128xf32, #tpu.memory_space<vmem>>, vector<8x128xf32>
    %c0_24 = arith.constant 0 : index
    %c0_25 = arith.constant 0 : index
    %35 = vector.load %arg11[%c0_24, %c0_25] : memref<8x32xf32, #tpu.memory_space<vmem>>, vector<8x32xf32>
    %c0_26 = arith.constant 0 : index
    %c0_27 = arith.constant 0 : index
    %36 = vector.load %arg8[%c0_26, %c0_27] : memref<32x128xf32, #tpu.memory_space<vmem>>, vector<32x128xf32>
    %cst_28 = arith.constant dense<0.000000e+00> : vector<8x128xf32>
    %37 = tpu.matmul %35, %36, %cst_28 {dimension_numbers = #tpu.dot_dimension_numbers<[1], [0], [0], [1], [0, 0, 1, 1], [], []>} : vector<8x32xf32>, vector<32x128xf32>, vector<8x128xf32> -> vector<8x128xf32>
    %38 = arith.addf %37, %34 : vector<8x128xf32>
    %39 = vector.extract_strided_slice %38 {offsets = [0, 0], sizes = [8, 96], strides = [1, 1]} : vector<8x128xf32> to vector<8x96xf32>
    %40 = arith.negf %39 : vector<8x96xf32>
    %41 = math.exp %40 : vector<8x96xf32>
    %cst_29 = arith.constant 1.000000e+00 : f32
    %42 = vector.broadcast %cst_29 : f32 to vector<8x96xf32>
    %43 = arith.addf %42, %41 : vector<8x96xf32>
    %44 = arith.divf %42, %43 : vector<8x96xf32>
    %45 = vector.extract_strided_slice %38 {offsets = [0, 96], sizes = [8, 32], strides = [1, 1]} : vector<8x128xf32> to vector<8x32xf32>
    %46 = math.tanh %45 : vector<8x32xf32>
    %47 = vector.extract_strided_slice %44 {offsets = [0, 0], sizes = [8, 32], strides = [1, 1]} : vector<8x96xf32> to vector<8x32xf32>
    %48 = vector.extract_strided_slice %44 {offsets = [0, 32], sizes = [8, 32], strides = [1, 1]} : vector<8x96xf32> to vector<8x32xf32>
    %49 = vector.extract_strided_slice %44 {offsets = [0, 64], sizes = [8, 32], strides = [1, 1]} : vector<8x96xf32> to vector<8x32xf32>
    %c0_30 = arith.constant 0 : index
    %c0_31 = arith.constant 0 : index
    %50 = vector.load %arg10[%c0_30, %c0_31] : memref<8x32xf32, #tpu.memory_space<vmem>>, vector<8x32xf32>
    %51 = arith.mulf %48, %50 : vector<8x32xf32>
    %52 = arith.mulf %47, %46 : vector<8x32xf32>
    %53 = arith.addf %51, %52 : vector<8x32xf32>
    %c0_32 = arith.constant 0 : index
    %c0_33 = arith.constant 0 : index
    %54 = vector.load %arg10[%c0_32, %c0_33] : memref<8x32xf32, #tpu.memory_space<vmem>>, vector<8x32xf32>
    tpu.vector_store %arg10[%c0_32, %c0_33], %53 {strides = array<i32>} : memref<8x32xf32, #tpu.memory_space<vmem>>, vector<8x32xf32>,
    %55 = math.tanh %53 : vector<8x32xf32>
    %56 = arith.mulf %49, %55 : vector<8x32xf32>
    %c0_34 = arith.constant 0 : index
    %c0_35 = arith.constant 0 : index
    %57 = vector.load %arg11[%c0_34, %c0_35] : memref<8x32xf32, #tpu.memory_space<vmem>>, vector<8x32xf32>
    tpu.vector_store %arg11[%c0_34, %c0_35], %56 {strides = array<i32>} : memref<8x32xf32, #tpu.memory_space<vmem>>, vector<8x32xf32>,
    %c1_i32 = arith.constant 1 : i32
    %c8_i32_36 = arith.constant 8 : i32
    %58 = arith.muli %c1_i32, %c8_i32_36 : i32
    %59 = tpu.assume_multiple %58, 8 : i32
    %60 = arith.index_cast %59 : i32 to index
    %c0_37 = arith.constant 0 : index
    %61 = vector.load %arg12[%60, %c0_37] : memref<64x128xf32, #tpu.memory_space<vmem>>, vector<8x128xf32>
    %c0_38 = arith.constant 0 : index
    %c0_39 = arith.constant 0 : index
    %62 = vector.load %arg11[%c0_38, %c0_39] : memref<8x32xf32, #tpu.memory_space<vmem>>, vector<8x32xf32>
    %c0_40 = arith.constant 0 : index
    %c0_41 = arith.constant 0 : index
    %63 = vector.load %arg8[%c0_40, %c0_41] : memref<32x128xf32, #tpu.memory_space<vmem>>, vector<32x128xf32>
    %cst_42 = arith.constant dense<0.000000e+00> : vector<8x128xf32>
    %64 = tpu.matmul %62, %63, %cst_42 {dimension_numbers = #tpu.dot_dimension_numbers<[1], [0], [0], [1], [0, 0, 1, 1], [], []>} : vector<8x32xf32>, vector<32x128xf32>, vector<8x128xf32> -> vector<8x128xf32>
    %65 = arith.addf %64, %61 : vector<8x128xf32>
    %66 = vector.extract_strided_slice %65 {offsets = [0, 0], sizes = [8, 96], strides = [1, 1]} : vector<8x128xf32> to vector<8x96xf32>
    %67 = arith.negf %66 : vector<8x96xf32>
    %68 = math.exp %67 : vector<8x96xf32>
    %cst_43 = arith.constant 1.000000e+00 : f32
    %69 = vector.broadcast %cst_43 : f32 to vector<8x96xf32>
    %70 = arith.addf %69, %68 : vector<8x96xf32>
    %71 = arith.divf %69, %70 : vector<8x96xf32>
    %72 = vector.extract_strided_slice %65 {offsets = [0, 96], sizes = [8, 32], strides = [1, 1]} : vector<8x128xf32> to vector<8x32xf32>
    %73 = math.tanh %72 : vector<8x32xf32>
    %74 = vector.extract_strided_slice %71 {offsets = [0, 0], sizes = [8, 32], strides = [1, 1]} : vector<8x96xf32> to vector<8x32xf32>
    %75 = vector.extract_strided_slice %71 {offsets = [0, 32], sizes = [8, 32], strides = [1, 1]} : vector<8x96xf32> to vector<8x32xf32>
    %76 = vector.extract_strided_slice %71 {offsets = [0, 64], sizes = [8, 32], strides = [1, 1]} : vector<8x96xf32> to vector<8x32xf32>
    %c0_44 = arith.constant 0 : index
    %c0_45 = arith.constant 0 : index
    %77 = vector.load %arg10[%c0_44, %c0_45] : memref<8x32xf32, #tpu.memory_space<vmem>>, vector<8x32xf32>
    %78 = arith.mulf %75, %77 : vector<8x32xf32>
    %79 = arith.mulf %74, %73 : vector<8x32xf32>
    %80 = arith.addf %78, %79 : vector<8x32xf32>
    %c0_46 = arith.constant 0 : index
    %c0_47 = arith.constant 0 : index
    %81 = vector.load %arg10[%c0_46, %c0_47] : memref<8x32xf32, #tpu.memory_space<vmem>>, vector<8x32xf32>
    tpu.vector_store %arg10[%c0_46, %c0_47], %80 {strides = array<i32>} : memref<8x32xf32, #tpu.memory_space<vmem>>, vector<8x32xf32>,
    %82 = math.tanh %80 : vector<8x32xf32>
    %83 = arith.mulf %76, %82 : vector<8x32xf32>
    %c0_48 = arith.constant 0 : index
    %c0_49 = arith.constant 0 : index
    %84 = vector.load %arg11[%c0_48, %c0_49] : memref<8x32xf32, #tpu.memory_space<vmem>>, vector<8x32xf32>
    tpu.vector_store %arg11[%c0_48, %c0_49], %83 {strides = array<i32>} : memref<8x32xf32, #tpu.memory_space<vmem>>, vector<8x32xf32>,
    %c2_i32 = arith.constant 2 : i32
    %c8_i32_50 = arith.constant 8 : i32
    %85 = arith.muli %c2_i32, %c8_i32_50 : i32
    %86 = tpu.assume_multiple %85, 8 : i32
    %87 = arith.index_cast %86 : i32 to index
    %c0_51 = arith.constant 0 : index
    %88 = vector.load %arg12[%87, %c0_51] : memref<64x128xf32, #tpu.memory_space<vmem>>, vector<8x128xf32>
    %c0_52 = arith.constant 0 : index
    %c0_53 = arith.constant 0 : index
    %89 = vector.load %arg11[%c0_52, %c0_53] : memref<8x32xf32, #tpu.memory_space<vmem>>, vector<8x32xf32>
    %c0_54 = arith.constant 0 : index
    %c0_55 = arith.constant 0 : index
    %90 = vector.load %arg8[%c0_54, %c0_55] : memref<32x128xf32, #tpu.memory_space<vmem>>, vector<32x128xf32>
    %cst_56 = arith.constant dense<0.000000e+00> : vector<8x128xf32>
    %91 = tpu.matmul %89, %90, %cst_56 {dimension_numbers = #tpu.dot_dimension_numbers<[1], [0], [0], [1], [0, 0, 1, 1], [], []>} : vector<8x32xf32>, vector<32x128xf32>, vector<8x128xf32> -> vector<8x128xf32>
    %92 = arith.addf %91, %88 : vector<8x128xf32>
    %93 = vector.extract_strided_slice %92 {offsets = [0, 0], sizes = [8, 96], strides = [1, 1]} : vector<8x128xf32> to vector<8x96xf32>
    %94 = arith.negf %93 : vector<8x96xf32>
    %95 = math.exp %94 : vector<8x96xf32>
    %cst_57 = arith.constant 1.000000e+00 : f32
    %96 = vector.broadcast %cst_57 : f32 to vector<8x96xf32>
    %97 = arith.addf %96, %95 : vector<8x96xf32>
    %98 = arith.divf %96, %97 : vector<8x96xf32>
    %99 = vector.extract_strided_slice %92 {offsets = [0, 96], sizes = [8, 32], strides = [1, 1]} : vector<8x128xf32> to vector<8x32xf32>
    %100 = math.tanh %99 : vector<8x32xf32>
    %101 = vector.extract_strided_slice %98 {offsets = [0, 0], sizes = [8, 32], strides = [1, 1]} : vector<8x96xf32> to vector<8x32xf32>
    %102 = vector.extract_strided_slice %98 {offsets = [0, 32], sizes = [8, 32], strides = [1, 1]} : vector<8x96xf32> to vector<8x32xf32>
    %103 = vector.extract_strided_slice %98 {offsets = [0, 64], sizes = [8, 32], strides = [1, 1]} : vector<8x96xf32> to vector<8x32xf32>
    %c0_58 = arith.constant 0 : index
    %c0_59 = arith.constant 0 : index
    %104 = vector.load %arg10[%c0_58, %c0_59] : memref<8x32xf32, #tpu.memory_space<vmem>>, vector<8x32xf32>
    %105 = arith.mulf %102, %104 : vector<8x32xf32>
    %106 = arith.mulf %101, %100 : vector<8x32xf32>
    %107 = arith.addf %105, %106 : vector<8x32xf32>
    %c0_60 = arith.constant 0 : index
    %c0_61 = arith.constant 0 : index
    %108 = vector.load %arg10[%c0_60, %c0_61] : memref<8x32xf32, #tpu.memory_space<vmem>>, vector<8x32xf32>
    tpu.vector_store %arg10[%c0_60, %c0_61], %107 {strides = array<i32>} : memref<8x32xf32, #tpu.memory_space<vmem>>, vector<8x32xf32>,
    %109 = math.tanh %107 : vector<8x32xf32>
    %110 = arith.mulf %103, %109 : vector<8x32xf32>
    %c0_62 = arith.constant 0 : index
    %c0_63 = arith.constant 0 : index
    %111 = vector.load %arg11[%c0_62, %c0_63] : memref<8x32xf32, #tpu.memory_space<vmem>>, vector<8x32xf32>
    tpu.vector_store %arg11[%c0_62, %c0_63], %110 {strides = array<i32>} : memref<8x32xf32, #tpu.memory_space<vmem>>, vector<8x32xf32>,
    %c3_i32 = arith.constant 3 : i32
    %c8_i32_64 = arith.constant 8 : i32
    %112 = arith.muli %c3_i32, %c8_i32_64 : i32
    %113 = tpu.assume_multiple %112, 8 : i32
    %114 = arith.index_cast %113 : i32 to index
    %c0_65 = arith.constant 0 : index
    %115 = vector.load %arg12[%114, %c0_65] : memref<64x128xf32, #tpu.memory_space<vmem>>, vector<8x128xf32>
    %c0_66 = arith.constant 0 : index
    %c0_67 = arith.constant 0 : index
    %116 = vector.load %arg11[%c0_66, %c0_67] : memref<8x32xf32, #tpu.memory_space<vmem>>, vector<8x32xf32>
    %c0_68 = arith.constant 0 : index
    %c0_69 = arith.constant 0 : index
    %117 = vector.load %arg8[%c0_68, %c0_69] : memref<32x128xf32, #tpu.memory_space<vmem>>, vector<32x128xf32>
    %cst_70 = arith.constant dense<0.000000e+00> : vector<8x128xf32>
    %118 = tpu.matmul %116, %117, %cst_70 {dimension_numbers = #tpu.dot_dimension_numbers<[1], [0], [0], [1], [0, 0, 1, 1], [], []>} : vector<8x32xf32>, vector<32x128xf32>, vector<8x128xf32> -> vector<8x128xf32>
    %119 = arith.addf %118, %115 : vector<8x128xf32>
    %120 = vector.extract_strided_slice %119 {offsets = [0, 0], sizes = [8, 96], strides = [1, 1]} : vector<8x128xf32> to vector<8x96xf32>
    %121 = arith.negf %120 : vector<8x96xf32>
    %122 = math.exp %121 : vector<8x96xf32>
    %cst_71 = arith.constant 1.000000e+00 : f32
    %123 = vector.broadcast %cst_71 : f32 to vector<8x96xf32>
    %124 = arith.addf %123, %122 : vector<8x96xf32>
    %125 = arith.divf %123, %124 : vector<8x96xf32>
    %126 = vector.extract_strided_slice %119 {offsets = [0, 96], sizes = [8, 32], strides = [1, 1]} : vector<8x128xf32> to vector<8x32xf32>
    %127 = math.tanh %126 : vector<8x32xf32>
    %128 = vector.extract_strided_slice %125 {offsets = [0, 0], sizes = [8, 32], strides = [1, 1]} : vector<8x96xf32> to vector<8x32xf32>
    %129 = vector.extract_strided_slice %125 {offsets = [0, 32], sizes = [8, 32], strides = [1, 1]} : vector<8x96xf32> to vector<8x32xf32>
    %130 = vector.extract_strided_slice %125 {offsets = [0, 64], sizes = [8, 32], strides = [1, 1]} : vector<8x96xf32> to vector<8x32xf32>
    %c0_72 = arith.constant 0 : index
    %c0_73 = arith.constant 0 : index
    %131 = vector.load %arg10[%c0_72, %c0_73] : memref<8x32xf32, #tpu.memory_space<vmem>>, vector<8x32xf32>
    %132 = arith.mulf %129, %131 : vector<8x32xf32>
    %133 = arith.mulf %128, %127 : vector<8x32xf32>
    %134 = arith.addf %132, %133 : vector<8x32xf32>
    %c0_74 = arith.constant 0 : index
    %c0_75 = arith.constant 0 : index
    %135 = vector.load %arg10[%c0_74, %c0_75] : memref<8x32xf32, #tpu.memory_space<vmem>>, vector<8x32xf32>
    tpu.vector_store %arg10[%c0_74, %c0_75], %134 {strides = array<i32>} : memref<8x32xf32, #tpu.memory_space<vmem>>, vector<8x32xf32>,
    %136 = math.tanh %134 : vector<8x32xf32>
    %137 = arith.mulf %130, %136 : vector<8x32xf32>
    %c0_76 = arith.constant 0 : index
    %c0_77 = arith.constant 0 : index
    %138 = vector.load %arg11[%c0_76, %c0_77] : memref<8x32xf32, #tpu.memory_space<vmem>>, vector<8x32xf32>
    tpu.vector_store %arg11[%c0_76, %c0_77], %137 {strides = array<i32>} : memref<8x32xf32, #tpu.memory_space<vmem>>, vector<8x32xf32>,
    %c4_i32 = arith.constant 4 : i32
    %c8_i32_78 = arith.constant 8 : i32
    %139 = arith.muli %c4_i32, %c8_i32_78 : i32
    %140 = tpu.assume_multiple %139, 8 : i32
    %141 = arith.index_cast %140 : i32 to index
    %c0_79 = arith.constant 0 : index
    %142 = vector.load %arg12[%141, %c0_79] : memref<64x128xf32, #tpu.memory_space<vmem>>, vector<8x128xf32>
    %c0_80 = arith.constant 0 : index
    %c0_81 = arith.constant 0 : index
    %143 = vector.load %arg11[%c0_80, %c0_81] : memref<8x32xf32, #tpu.memory_space<vmem>>, vector<8x32xf32>
    %c0_82 = arith.constant 0 : index
    %c0_83 = arith.constant 0 : index
    %144 = vector.load %arg8[%c0_82, %c0_83] : memref<32x128xf32, #tpu.memory_space<vmem>>, vector<32x128xf32>
    %cst_84 = arith.constant dense<0.000000e+00> : vector<8x128xf32>
    %145 = tpu.matmul %143, %144, %cst_84 {dimension_numbers = #tpu.dot_dimension_numbers<[1], [0], [0], [1], [0, 0, 1, 1], [], []>} : vector<8x32xf32>, vector<32x128xf32>, vector<8x128xf32> -> vector<8x128xf32>
    %146 = arith.addf %145, %142 : vector<8x128xf32>
    %147 = vector.extract_strided_slice %146 {offsets = [0, 0], sizes = [8, 96], strides = [1, 1]} : vector<8x128xf32> to vector<8x96xf32>
    %148 = arith.negf %147 : vector<8x96xf32>
    %149 = math.exp %148 : vector<8x96xf32>
    %cst_85 = arith.constant 1.000000e+00 : f32
    %150 = vector.broadcast %cst_85 : f32 to vector<8x96xf32>
    %151 = arith.addf %150, %149 : vector<8x96xf32>
    %152 = arith.divf %150, %151 : vector<8x96xf32>
    %153 = vector.extract_strided_slice %146 {offsets = [0, 96], sizes = [8, 32], strides = [1, 1]} : vector<8x128xf32> to vector<8x32xf32>
    %154 = math.tanh %153 : vector<8x32xf32>
    %155 = vector.extract_strided_slice %152 {offsets = [0, 0], sizes = [8, 32], strides = [1, 1]} : vector<8x96xf32> to vector<8x32xf32>
    %156 = vector.extract_strided_slice %152 {offsets = [0, 32], sizes = [8, 32], strides = [1, 1]} : vector<8x96xf32> to vector<8x32xf32>
    %157 = vector.extract_strided_slice %152 {offsets = [0, 64], sizes = [8, 32], strides = [1, 1]} : vector<8x96xf32> to vector<8x32xf32>
    %c0_86 = arith.constant 0 : index
    %c0_87 = arith.constant 0 : index
    %158 = vector.load %arg10[%c0_86, %c0_87] : memref<8x32xf32, #tpu.memory_space<vmem>>, vector<8x32xf32>
    %159 = arith.mulf %156, %158 : vector<8x32xf32>
    %160 = arith.mulf %155, %154 : vector<8x32xf32>
    %161 = arith.addf %159, %160 : vector<8x32xf32>
    %c0_88 = arith.constant 0 : index
    %c0_89 = arith.constant 0 : index
    %162 = vector.load %arg10[%c0_88, %c0_89] : memref<8x32xf32, #tpu.memory_space<vmem>>, vector<8x32xf32>
    tpu.vector_store %arg10[%c0_88, %c0_89], %161 {strides = array<i32>} : memref<8x32xf32, #tpu.memory_space<vmem>>, vector<8x32xf32>,
    %163 = math.tanh %161 : vector<8x32xf32>
    %164 = arith.mulf %157, %163 : vector<8x32xf32>
    %c0_90 = arith.constant 0 : index
    %c0_91 = arith.constant 0 : index
    %165 = vector.load %arg11[%c0_90, %c0_91] : memref<8x32xf32, #tpu.memory_space<vmem>>, vector<8x32xf32>
    tpu.vector_store %arg11[%c0_90, %c0_91], %164 {strides = array<i32>} : memref<8x32xf32, #tpu.memory_space<vmem>>, vector<8x32xf32>,
    %c5_i32 = arith.constant 5 : i32
    %c8_i32_92 = arith.constant 8 : i32
    %166 = arith.muli %c5_i32, %c8_i32_92 : i32
    %167 = tpu.assume_multiple %166, 8 : i32
    %168 = arith.index_cast %167 : i32 to index
    %c0_93 = arith.constant 0 : index
    %169 = vector.load %arg12[%168, %c0_93] : memref<64x128xf32, #tpu.memory_space<vmem>>, vector<8x128xf32>
    %c0_94 = arith.constant 0 : index
    %c0_95 = arith.constant 0 : index
    %170 = vector.load %arg11[%c0_94, %c0_95] : memref<8x32xf32, #tpu.memory_space<vmem>>, vector<8x32xf32>
    %c0_96 = arith.constant 0 : index
    %c0_97 = arith.constant 0 : index
    %171 = vector.load %arg8[%c0_96, %c0_97] : memref<32x128xf32, #tpu.memory_space<vmem>>, vector<32x128xf32>
    %cst_98 = arith.constant dense<0.000000e+00> : vector<8x128xf32>
    %172 = tpu.matmul %170, %171, %cst_98 {dimension_numbers = #tpu.dot_dimension_numbers<[1], [0], [0], [1], [0, 0, 1, 1], [], []>} : vector<8x32xf32>, vector<32x128xf32>, vector<8x128xf32> -> vector<8x128xf32>
    %173 = arith.addf %172, %169 : vector<8x128xf32>
    %174 = vector.extract_strided_slice %173 {offsets = [0, 0], sizes = [8, 96], strides = [1, 1]} : vector<8x128xf32> to vector<8x96xf32>
    %175 = arith.negf %174 : vector<8x96xf32>
    %176 = math.exp %175 : vector<8x96xf32>
    %cst_99 = arith.constant 1.000000e+00 : f32
    %177 = vector.broadcast %cst_99 : f32 to vector<8x96xf32>
    %178 = arith.addf %177, %176 : vector<8x96xf32>
    %179 = arith.divf %177, %178 : vector<8x96xf32>
    %180 = vector.extract_strided_slice %173 {offsets = [0, 96], sizes = [8, 32], strides = [1, 1]} : vector<8x128xf32> to vector<8x32xf32>
    %181 = math.tanh %180 : vector<8x32xf32>
    %182 = vector.extract_strided_slice %179 {offsets = [0, 0], sizes = [8, 32], strides = [1, 1]} : vector<8x96xf32> to vector<8x32xf32>
    %183 = vector.extract_strided_slice %179 {offsets = [0, 32], sizes = [8, 32], strides = [1, 1]} : vector<8x96xf32> to vector<8x32xf32>
    %184 = vector.extract_strided_slice %179 {offsets = [0, 64], sizes = [8, 32], strides = [1, 1]} : vector<8x96xf32> to vector<8x32xf32>
    %c0_100 = arith.constant 0 : index
    %c0_101 = arith.constant 0 : index
    %185 = vector.load %arg10[%c0_100, %c0_101] : memref<8x32xf32, #tpu.memory_space<vmem>>, vector<8x32xf32>
    %186 = arith.mulf %183, %185 : vector<8x32xf32>
    %187 = arith.mulf %182, %181 : vector<8x32xf32>
    %188 = arith.addf %186, %187 : vector<8x32xf32>
    %c0_102 = arith.constant 0 : index
    %c0_103 = arith.constant 0 : index
    %189 = vector.load %arg10[%c0_102, %c0_103] : memref<8x32xf32, #tpu.memory_space<vmem>>, vector<8x32xf32>
    tpu.vector_store %arg10[%c0_102, %c0_103], %188 {strides = array<i32>} : memref<8x32xf32, #tpu.memory_space<vmem>>, vector<8x32xf32>,
    %190 = math.tanh %188 : vector<8x32xf32>
    %191 = arith.mulf %184, %190 : vector<8x32xf32>
    %c0_104 = arith.constant 0 : index
    %c0_105 = arith.constant 0 : index
    %192 = vector.load %arg11[%c0_104, %c0_105] : memref<8x32xf32, #tpu.memory_space<vmem>>, vector<8x32xf32>
    tpu.vector_store %arg11[%c0_104, %c0_105], %191 {strides = array<i32>} : memref<8x32xf32, #tpu.memory_space<vmem>>, vector<8x32xf32>,
    %c6_i32 = arith.constant 6 : i32
    %c8_i32_106 = arith.constant 8 : i32
    %193 = arith.muli %c6_i32, %c8_i32_106 : i32
    %194 = tpu.assume_multiple %193, 8 : i32
    %195 = arith.index_cast %194 : i32 to index
    %c0_107 = arith.constant 0 : index
    %196 = vector.load %arg12[%195, %c0_107] : memref<64x128xf32, #tpu.memory_space<vmem>>, vector<8x128xf32>
    %c0_108 = arith.constant 0 : index
    %c0_109 = arith.constant 0 : index
    %197 = vector.load %arg11[%c0_108, %c0_109] : memref<8x32xf32, #tpu.memory_space<vmem>>, vector<8x32xf32>
    %c0_110 = arith.constant 0 : index
    %c0_111 = arith.constant 0 : index
    %198 = vector.load %arg8[%c0_110, %c0_111] : memref<32x128xf32, #tpu.memory_space<vmem>>, vector<32x128xf32>
    %cst_112 = arith.constant dense<0.000000e+00> : vector<8x128xf32>
    %199 = tpu.matmul %197, %198, %cst_112 {dimension_numbers = #tpu.dot_dimension_numbers<[1], [0], [0], [1], [0, 0, 1, 1], [], []>} : vector<8x32xf32>, vector<32x128xf32>, vector<8x128xf32> -> vector<8x128xf32>
    %200 = arith.addf %199, %196 : vector<8x128xf32>
    %201 = vector.extract_strided_slice %200 {offsets = [0, 0], sizes = [8, 96], strides = [1, 1]} : vector<8x128xf32> to vector<8x96xf32>
    %202 = arith.negf %201 : vector<8x96xf32>
    %203 = math.exp %202 : vector<8x96xf32>
    %cst_113 = arith.constant 1.000000e+00 : f32
    %204 = vector.broadcast %cst_113 : f32 to vector<8x96xf32>
    %205 = arith.addf %204, %203 : vector<8x96xf32>
    %206 = arith.divf %204, %205 : vector<8x96xf32>
    %207 = vector.extract_strided_slice %200 {offsets = [0, 96], sizes = [8, 32], strides = [1, 1]} : vector<8x128xf32> to vector<8x32xf32>
    %208 = math.tanh %207 : vector<8x32xf32>
    %209 = vector.extract_strided_slice %206 {offsets = [0, 0], sizes = [8, 32], strides = [1, 1]} : vector<8x96xf32> to vector<8x32xf32>
    %210 = vector.extract_strided_slice %206 {offsets = [0, 32], sizes = [8, 32], strides = [1, 1]} : vector<8x96xf32> to vector<8x32xf32>
    %211 = vector.extract_strided_slice %206 {offsets = [0, 64], sizes = [8, 32], strides = [1, 1]} : vector<8x96xf32> to vector<8x32xf32>
    %c0_114 = arith.constant 0 : index
    %c0_115 = arith.constant 0 : index
    %212 = vector.load %arg10[%c0_114, %c0_115] : memref<8x32xf32, #tpu.memory_space<vmem>>, vector<8x32xf32>
    %213 = arith.mulf %210, %212 : vector<8x32xf32>
    %214 = arith.mulf %209, %208 : vector<8x32xf32>
    %215 = arith.addf %213, %214 : vector<8x32xf32>
    %c0_116 = arith.constant 0 : index
    %c0_117 = arith.constant 0 : index
    %216 = vector.load %arg10[%c0_116, %c0_117] : memref<8x32xf32, #tpu.memory_space<vmem>>, vector<8x32xf32>
    tpu.vector_store %arg10[%c0_116, %c0_117], %215 {strides = array<i32>} : memref<8x32xf32, #tpu.memory_space<vmem>>, vector<8x32xf32>,
    %217 = math.tanh %215 : vector<8x32xf32>
    %218 = arith.mulf %211, %217 : vector<8x32xf32>
    %c0_118 = arith.constant 0 : index
    %c0_119 = arith.constant 0 : index
    %219 = vector.load %arg11[%c0_118, %c0_119] : memref<8x32xf32, #tpu.memory_space<vmem>>, vector<8x32xf32>
    tpu.vector_store %arg11[%c0_118, %c0_119], %218 {strides = array<i32>} : memref<8x32xf32, #tpu.memory_space<vmem>>, vector<8x32xf32>,
    %c7_i32 = arith.constant 7 : i32
    %c8_i32_120 = arith.constant 8 : i32
    %220 = arith.muli %c7_i32, %c8_i32_120 : i32
    %221 = tpu.assume_multiple %220, 8 : i32
    %222 = arith.index_cast %221 : i32 to index
    %c0_121 = arith.constant 0 : index
    %223 = vector.load %arg12[%222, %c0_121] : memref<64x128xf32, #tpu.memory_space<vmem>>, vector<8x128xf32>
    %c0_122 = arith.constant 0 : index
    %c0_123 = arith.constant 0 : index
    %224 = vector.load %arg11[%c0_122, %c0_123] : memref<8x32xf32, #tpu.memory_space<vmem>>, vector<8x32xf32>
    %c0_124 = arith.constant 0 : index
    %c0_125 = arith.constant 0 : index
    %225 = vector.load %arg8[%c0_124, %c0_125] : memref<32x128xf32, #tpu.memory_space<vmem>>, vector<32x128xf32>
    %cst_126 = arith.constant dense<0.000000e+00> : vector<8x128xf32>
    %226 = tpu.matmul %224, %225, %cst_126 {dimension_numbers = #tpu.dot_dimension_numbers<[1], [0], [0], [1], [0, 0, 1, 1], [], []>} : vector<8x32xf32>, vector<32x128xf32>, vector<8x128xf32> -> vector<8x128xf32>
    %227 = arith.addf %226, %223 : vector<8x128xf32>
    %228 = vector.extract_strided_slice %227 {offsets = [0, 0], sizes = [8, 96], strides = [1, 1]} : vector<8x128xf32> to vector<8x96xf32>
    %229 = arith.negf %228 : vector<8x96xf32>
    %230 = math.exp %229 : vector<8x96xf32>
    %cst_127 = arith.constant 1.000000e+00 : f32
    %231 = vector.broadcast %cst_127 : f32 to vector<8x96xf32>
    %232 = arith.addf %231, %230 : vector<8x96xf32>
    %233 = arith.divf %231, %232 : vector<8x96xf32>
    %234 = vector.extract_strided_slice %227 {offsets = [0, 96], sizes = [8, 32], strides = [1, 1]} : vector<8x128xf32> to vector<8x32xf32>
    %235 = math.tanh %234 : vector<8x32xf32>
    %236 = vector.extract_strided_slice %233 {offsets = [0, 0], sizes = [8, 32], strides = [1, 1]} : vector<8x96xf32> to vector<8x32xf32>
    %237 = vector.extract_strided_slice %233 {offsets = [0, 32], sizes = [8, 32], strides = [1, 1]} : vector<8x96xf32> to vector<8x32xf32>
    %238 = vector.extract_strided_slice %233 {offsets = [0, 64], sizes = [8, 32], strides = [1, 1]} : vector<8x96xf32> to vector<8x32xf32>
    %c0_128 = arith.constant 0 : index
    %c0_129 = arith.constant 0 : index
    %239 = vector.load %arg10[%c0_128, %c0_129] : memref<8x32xf32, #tpu.memory_space<vmem>>, vector<8x32xf32>
    %240 = arith.mulf %237, %239 : vector<8x32xf32>
    %241 = arith.mulf %236, %235 : vector<8x32xf32>
    %242 = arith.addf %240, %241 : vector<8x32xf32>
    %c0_130 = arith.constant 0 : index
    %c0_131 = arith.constant 0 : index
    %243 = vector.load %arg10[%c0_130, %c0_131] : memref<8x32xf32, #tpu.memory_space<vmem>>, vector<8x32xf32>
    tpu.vector_store %arg10[%c0_130, %c0_131], %242 {strides = array<i32>} : memref<8x32xf32, #tpu.memory_space<vmem>>, vector<8x32xf32>,
    %244 = math.tanh %242 : vector<8x32xf32>
    %245 = arith.mulf %238, %244 : vector<8x32xf32>
    %c0_132 = arith.constant 0 : index
    %c0_133 = arith.constant 0 : index
    %246 = vector.load %arg11[%c0_132, %c0_133] : memref<8x32xf32, #tpu.memory_space<vmem>>, vector<8x32xf32>
    tpu.vector_store %arg11[%c0_132, %c0_133], %245 {strides = array<i32>} : memref<8x32xf32, #tpu.memory_space<vmem>>, vector<8x32xf32>,
    %c8_i32_134 = arith.constant 8 : i32
    return
  }
  func.func @transform_0(%arg0: i32) -> (i32, i32) {
    %c0_i32 = arith.constant 0 : i32
    %c0_i32_0 = arith.constant 0 : i32
    return %arg0, %c0_i32 : i32, i32
  }
  func.func @transform_1(%arg0: i32) -> (i32, i32) {
    %c0_i32 = arith.constant 0 : i32
    %c0_i32_0 = arith.constant 0 : i32
    %c0_i32_1 = arith.constant 0 : i32
    return %c0_i32, %c0_i32_0 : i32, i32
  }
  func.func @transform_2(%arg0: i32) -> (i32, i32) {
    %c0_i32 = arith.constant 0 : i32
    %c0_i32_0 = arith.constant 0 : i32
    %c0_i32_1 = arith.constant 0 : i32
    return %c0_i32, %c0_i32_0 : i32, i32
  }
  func.func @transform_3(%arg0: i32) -> (i32, i32) {
    %c0_i32 = arith.constant 0 : i32
    %c0_i32_0 = arith.constant 0 : i32
    %c0_i32_1 = arith.constant 0 : i32
    return %c0_i32, %c0_i32_0 : i32, i32
  }
  func.func @transform_4(%arg0: i32) -> (i32, i32) {
    %c0_i32 = arith.constant 0 : i32
    %c0_i32_0 = arith.constant 0 : i32
    %c0_i32_1 = arith.constant 0 : i32
    return %c0_i32, %c0_i32_0 : i32, i32
  }
  func.func @transform_5(%arg0: i32) -> (i32, i32) {
    %c0_i32 = arith.constant 0 : i32
    %c0_i32_0 = arith.constant 0 : i32
    %c0_i32_1 = arith.constant 0 : i32
    return %c0_i32, %c0_i32_0 : i32, i32
  }
  func.func @transform_6(%arg0: i32) -> (i32, i32) {
    %c0_i32 = arith.constant 0 : i32
    %c0_i32_0 = arith.constant 0 : i32
    %c0_i32_1 = arith.constant 0 : i32
    return %c0_i32, %c0_i32_0 : i32, i32
  }
  func.func @transform_7(%arg0: i32) -> (i32, i32) {
    %c0_i32 = arith.constant 0 : i32
    %c0_i32_0 = arith.constant 0 : i32
    %c0_i32_1 = arith.constant 0 : i32
    return %c0_i32, %c0_i32_0 : i32, i32
  }
  func.func @transform_8(%arg0: i32) -> (i32, i32) {
    %c0_i32 = arith.constant 0 : i32
    %c0_i32_0 = arith.constant 0 : i32
    %c0_i32_1 = arith.constant 0 : i32
    return %c0_i32, %c0_i32_0 : i32, i32
  }
  func.func @transform_9(%arg0: i32) -> (i32, i32) {
    %c0_i32 = arith.constant 0 : i32
    %c0_i32_0 = arith.constant 0 : i32
    %c0_i32_1 = arith.constant 0 : i32
    return %c0_i32, %c0_i32_0 : i32, i32
  }
}

</mosaic_0001>

<bundles_post_ra>
// kernel: rollout_encoder_forward.1
= control target key start
LH: loop header
LB: loop body
LE: loop exit
PB: predicated region body
PF: predicated region fallthrough
CT: control target
= control target key end

     0   :  { %14 = vsyncpa [#allocation5], 0  ;;  %s2567_s0 = inlined_call_operand.vmem [shape: f32[64,5], index: 0, kind: input, shape index: {}]   ;;  %s2568_s1 = inlined_call_operand.hbm [shape: f32[4,64], index: 1, kind: input, shape index: {}]   ;;  %s2569_s2 = inlined_call_operand.hbm [shape: f32[1,64], index: 2, kind: input, shape index: {}]   ;;  %s2570_s3 = inlined_call_operand.vmem [shape: f32[64,64], index: 3, kind: input, shape index: {}]   ;;  %s2571_s4 = inlined_call_operand.hbm [shape: f32[1,64], index: 4, kind: input, shape index: {}]   ;;  %s2572_s5 = inlined_call_operand.vmem [shape: f32[64,128], index: 5, kind: input, shape index: {}]   ;;  %s2573_s6 = inlined_call_operand.vmem [shape: f32[1,128], index: 6, kind: input, shape index: {}]   ;;  %s2574_s7 = inlined_call_operand.vmem [shape: f32[32,128], index: 7, kind: input, shape index: {}]   ;;  %s2575_s8 = inlined_call_operand.hbm [shape: f32[1,128], index: 8, kind: input, shape index: {}]   ;;  %s2576_s9 = inlined_call_operand.vmem [shape: f32[8,32], index: 9, kind: output, shape index: {}]  }
   0x1   :  { %15 = vsyncpa [#allocation7], 0 }
   0x2   :  { %16 = vsyncpa [#allocation10], 0  ;;  %s2098_s30 = smov [#allocation6]   ;;  %s2099_s11 = smov [#allocation4]  }
   0x3   :  { %s35_s10 = sshll.u32 %s2098_s30, 4  ;;  %s25_s12 = sshll.u32 %s2099_s11, 4  ;;  %s36_s10 = int_to_ptr.vmem [resolvable:$true] %s35_s10  ;;  %s26_s12 = int_to_ptr.vmem [resolvable:$true] %s25_s12 }
   0x4   :  { %s2004_s15 = scalar_lea.hbm %s2569_s2, 16 }
   0x5   :  { %p2005_p0 = scmp.ne.s32.totalorder %s2569_s2, %s2004_s15  ;;  %p2008_p1 = scmp.lt.u32.totalorder %s2004_s15, %s2569_s2 }
   0x7   :  { %p2010_p2 = pnand %p2008_p1, %p2005_p0 }
   0x9   :  { %2013 = shalt.err (!%p2010_p2)
}
   0xa   :  { %s2014_s20 = scalar_lea.vmem %s36_s10, 16  ;;  %s2018_s21 = scalar_lea.vmem %s36_s10, 32 }
   0xb   :  { %p2015_p3 = scmp.ne.s32.totalorder %s36_s10, %s2014_s20  ;;  %p2019_p4 = scmp.lt.s32.totalorder %s36_s10, %s36_s10 }
   0xc   :  { %p2020_p5 = scmp.lt.s32.totalorder %s2018_s21, %s2014_s20 }
   0xe   :  { %p2021_p6 = por %p2020_p5, %p2019_p4 }
  0x10   :  { %p2022_p7 = pnand %p2021_p6, %p2015_p3 }
  0x12   :  { %2025 = shalt.err (!%p2022_p7)
}
  0x13   :  { %38 = dma.hbm_to_vmem [thread:$0]  %s2569_s2, 16, %s36_s10, [#allocation7]  }
  0x14   :  { %s2026_s26 = scalar_lea.hbm %s2568_s1, 64 }
  0x15   :  { %p2027_p8 = scmp.ne.s32.totalorder %s2568_s1, %s2026_s26  ;;  %p2030_p9 = scmp.lt.u32.totalorder %s2026_s26, %s2568_s1 }
  0x17   :  { %p2032_p10 = pnand %p2030_p9, %p2027_p8 }
  0x19   :  { %2035 = shalt.err (!%p2032_p10)
}
  0x1a   :  { %s2036_s11 = scalar_lea.vmem %s26_s12, 64  ;;  %p2041_p12 = scmp.lt.s32.totalorder %s26_s12, %s26_s12 }
  0x1b   :  { %p2037_p11 = scmp.ne.s32.totalorder %s26_s12, %s2036_s11  ;;  %p2042_p13 = scmp.lt.s32.totalorder %s2036_s11, %s2036_s11 }
  0x1d   :  { %p2043_p0 = por %p2042_p13, %p2041_p12 }
  0x1f   :  { %p2044_p1 = pnand %p2043_p0, %p2037_p11 }
  0x21   :  { %2047 = shalt.err (!%p2044_p1)
}
  0x22   :  { %28 = dma.hbm_to_vmem [thread:$0]  %s2568_s1, 64, %s26_s12, [#allocation5]  }
  0x23   :  { %s2100_s13 = smov [#allocation8]   ;;  %s2101_s15 = smov [#allocation9]  }
  0x24   :  { %s47_s14 = sshll.u32 %s2100_s13, 4  ;;  %s63_s16 = sshll.u32 %s2101_s15, 4  ;;  %s48_s14 = int_to_ptr.vmem [resolvable:$true] %s47_s14  ;;  %s64_s16 = int_to_ptr.vmem [resolvable:$true] %s63_s16 }
  0x25   :  { %s2048_s19 = scalar_lea.hbm %s2571_s4, 16 }
  0x26   :  { %p2049_p2 = scmp.ne.s32.totalorder %s2571_s4, %s2048_s19  ;;  %p2052_p3 = scmp.lt.u32.totalorder %s2048_s19, %s2571_s4 }
  0x28   :  { %p2054_p4 = pnand %p2052_p3, %p2049_p2 }
  0x2a   :  { %2057 = shalt.err (!%p2054_p4)
}
  0x2b   :  { %s2058_s1 = scalar_lea.vmem %s48_s14, 16  ;;  %s2062_s12 = scalar_lea.vmem %s48_s14, 32 }
  0x2c   :  { %p2059_p5 = scmp.ne.s32.totalorder %s48_s14, %s2058_s1  ;;  %p2063_p6 = scmp.lt.s32.totalorder %s48_s14, %s48_s14 }
  0x2d   :  { %p2064_p7 = scmp.lt.s32.totalorder %s2062_s12, %s2058_s1 }
  0x2f   :  { %p2065_p8 = por %p2064_p7, %p2063_p6 }
  0x31   :  { %p2066_p9 = pnand %p2065_p8, %p2059_p5 }
  0x33   :  { %2069 = shalt.err (!%p2066_p9)
}
  0x34   :  { %50 = dma.hbm_to_vmem [thread:$0]  %s2571_s4, 16, %s48_s14, [#allocation7]  }
  0x35   :  { %s2070_s28 = scalar_lea.hbm %s2575_s8, 16 }
  0x36   :  { %p2071_p10 = scmp.ne.s32.totalorder %s2575_s8, %s2070_s28  ;;  %p2074_p11 = scmp.lt.u32.totalorder %s2070_s28, %s2575_s8 }
  0x38   :  { %p2076_p12 = pnand %p2074_p11, %p2071_p10 }
  0x3a   :  { %2079 = shalt.err (!%p2076_p12)
}
  0x3b   :  { %s2080_s10 = scalar_lea.vmem %s64_s16, 16  ;;  %s2084_s13 = scalar_lea.vmem %s64_s16, 32 }
  0x3c   :  { %p2081_p13 = scmp.ne.s32.totalorder %s64_s16, %s2080_s10  ;;  %p2085_p0 = scmp.lt.s32.totalorder %s64_s16, %s64_s16 }
  0x3d   :  { %p2086_p1 = scmp.lt.s32.totalorder %s2084_s13, %s2080_s10 }
  0x3f   :  { %p2087_p2 = por %p2086_p1, %p2085_p0 }
  0x41   :  { %p2088_p3 = pnand %p2087_p2, %p2081_p13 }
  0x43   :  { %2091 = shalt.err (!%p2088_p3)
}
  0x44   :  { %66 = dma.hbm_to_vmem [thread:$0]  %s2575_s8, 16, %s64_s16, [#allocation10]  }
  0x45   :  { %2092 = dma.done.wait [#allocation5], 64  }
  0x46   :  { %2093 = vsyncadd [#allocation5], 4294967232 }
  0x47   :  { %2094 = dma.done.wait [#allocation7], 32  }
  0x48   :  { %2095 = vsyncadd [#allocation7], 4294967264 }
  0x49   :  { %2096 = dma.done.wait [#allocation10], 16  }
  0x4a   :  { %2097 = vsyncadd [#allocation10], 4294967280  ;;  %vm127_vm0 = vcmask 1043456   ;;  %vm102_vm1 = vcmask 31744   ;;  %v94_v0 = vld [vmem:[#allocation4] sm:$0xf] }
  0x4b   :  { %v2210_v1 = vld [vmem:[%s2567_s0] sm:$0xff]  ;;  %v2215_v2 = vld [vmem:[%s2567_s0 + $0x8] sm:$0xff]  ;;  %1689 = vmatprep.subr.msk.mxu0 %vm127_vm0, %v94_v0  ;;  %v2228_v5 = vld [vmem:[%s2567_s0 + $0x10] sm:$0xff]  ;;  %v2102_v27 = vmov 0.0|0.0   ;;  %vm259_vm2 = vcmask 523264   ;;  %vm83_vm3 = vcmask 261120  }
  0x4c   :  { %1691 = vmatprep.mubr.msk.f32.mxu0 %vm102_vm1, %v2210_v1  ;;  %v244_v3 = vld [vmem:[%s2570_s3] sm:$0xff]  ;;  %v245_v4 = vld [vmem:[%s2570_s3 + $0x8] sm:$0xff]  ;;  %1690 = vmatpush3.msk.msra.mxu0 %vm127_vm0, %v94_v0  ;;  %v246_v7 = vld [vmem:[%s2570_s3 + $0x10] sm:$0xff]  ;;  %v2103_v62 = vmov 0.0   ;;  %vm2104_vm4 = vmmov 0   ;;  %s2108_s22 = smov 96  }
  0x4d   :  { %v1847_v6 = vpack.c.bf16 %v245_v4, %v244_v3  ;;  %v247_v8 = vld [vmem:[%s2570_s3 + $0x18] sm:$0xff]  ;;  %1692 = vmatmul.mubr.msk.f32.vlgmr.msra.gmra.mrb[0].mxu0 %vm102_vm1, %v2215_v2  ;;  %v248_v10 = vld [vmem:[%s2570_s3 + $0x20] sm:$0xff]  ;;  %v249_v12 = vld [vmem:[%s2570_s3 + $0x28] sm:$0xff]  ;;  %84 = vst.msk [vmem:[#allocation2] sm:$0xff] %vm83_vm3, %v2103_v62  ;;  %v2105_v4 = vmov 4  }
  0x4e   :  { %v1851_v9 = vpack.c.bf16 %v247_v8, %v246_v7  ;;  %1694 = vmatprep.mubr.msk.f32.mxu0 %vm102_vm1, %v2228_v5  ;;  %v2246_v11 = vld [vmem:[%s2567_s0 + $0x18] sm:$0xff]  ;;  %v2254_v13 = vld [vmem:[%s2567_s0 + $0x20] sm:$0xff]  ;;  %v1855_v14 = vpack.c.bf16 %v249_v12, %v248_v10  ;;  %v2263_v15 = vld [vmem:[%s2567_s0 + $0x28] sm:$0xff]  ;;  %85 = vst.msk [vmem:[%s2576_s9] sm:$0xff] %vm83_vm3, %v2103_v62  ;;  %1938 = vset.pattern.permute.xlu0 %v2105_v4 }
  0x4f   :  { %1848 = vmatprep.subr.bf16.mxu1 %v1847_v6  ;;  %v250_v16 = vld [vmem:[%s2570_s3 + $0x30] sm:$0xff]  ;;  %v251_v17 = vld [vmem:[%s2570_s3 + $0x38] sm:$0xff]  ;;  %v397_v21 = vld [vmem:[%s2572_s5] sm:$0xff]  ;;  %407 = vperm.xlu0 %1938, %v2210_v1  }
  0x50   :  { %1850 = vmatpush3.bf16.msra.mxu1 %v1847_v6  ;;  %v2276_v18 = vld [vmem:[%s2567_s0 + $0x30] sm:$0xff]  ;;  %v1859_v19 = vpack.c.bf16 %v251_v17, %v250_v16  ;;  %v2283_v20 = vld [vmem:[%s2567_s0 + $0x38] sm:$0xff]  ;;  %v398_v22 = vld [vmem:[%s2572_s5 + $0x8] sm:$0xff]  ;;  %1939 = vset.pattern.permute.xlu1 %v2105_v4 }
  0x51   :  { %1852 = vmatprep.subr.bf16.mxu1 %v1851_v9  ;;  %1695 = vmatmul.mubr.msk.f32.gmra.mrb[2].mxu0 %vm102_vm1, %v2246_v11  ;;  %v1863_v23 = vpack.c.bf16 %v398_v22, %v397_v21  ;;  %v399_v24 = vld [vmem:[%s2572_s5 + $0x10] sm:$0xff]  ;;  %v400_v25 = vld [vmem:[%s2572_s5 + $0x18] sm:$0xff]  ;;  %v401_v28 = vld [vmem:[%s2572_s5 + $0x20] sm:$0xff] }
  0x52   :  { %1697 = vmatprep.mubr.msk.f32.mxu0 %vm102_vm1, %v2254_v13  ;;  %v1867_v26 = vpack.c.bf16 %v400_v25, %v399_v24  ;;  %v402_v29 = vld [vmem:[%s2572_s5 + $0x28] sm:$0xff]  ;;  %v606_v35 = vld [vmem:[%s2574_s7] sm:$0xff]  ;;  %v403_v59 = vld [vmem:[%s2572_s5 + $0x30] sm:$0xff] }
  0x53   :  { %1864 = vmatprep.subr.bf16.mxu0 %v1863_v23  ;;  %v1871_v30 = vpack.c.bf16 %v402_v29, %v401_v28  ;;  %v1563_v31 = vld [vmem:[#allocation6] ss:$0 sm:$0xff]  ;;  %v404_v60 = vld [vmem:[%s2572_s5 + $0x38] sm:$0xff]  ;;  %v608_v63 = vld [vmem:[%s2574_s7 + $0x10] sm:$0xff] }
  0x54   :  { %1854 = vmatpush3.bf16.msra.mxu1 %v1851_v9  ;;  %1866 = vmatpush3.bf16.msra.mxu0 %v1863_v23  ;;  %v607_v36 = vld [vmem:[%s2574_s7 + $0x8] sm:$0xff]  ;;  %v1875_v61 = vpack.c.bf16 %v404_v60, %v403_v59  ;;  %v609_v0 = vld [vmem:[%s2574_s7 + $0x18] sm:$0xff]  ;;  %v605_v6 = vld [vmem:[#allocation2] sm:$0xff]  ;;  %s2106_s7 = smov 32  }
  0x55   :  { %1856 = vmatprep.subr.bf16.mxu1 %v1855_v14  ;;  %1698 = vmatmul.mubr.msk.f32.gmra.mrb[4].mxu0 %vm102_vm1, %v2263_v15  ;;  %v2312_v40 = vpack.c.bf16 %v607_v36, %v606_v35  ;;  %v2343_v3 = vpack.c.bf16 %v609_v0, %v608_v63  ;;  %v691_v7 = vld [vmem:[%s2576_s9] sm:$0xff]  ;;  %v1573_v1 = vld [vmem:[#allocation8] ss:$0 sm:$0xff] }
  0x56   :  { %1700 = vmatprep.mubr.msk.f32.mxu0 %vm102_vm1, %v2276_v18  ;;  %1868 = vmatprep.subr.bf16.mxu0 %v1867_v26 }
  0x57   :  { %693 = vrot.lane.b32.xlu1 %v691_v7, %s2106_s7 }
  0x58   :  { %1858 = vmatpush3.bf16.msra.mxu1 %v1855_v14  ;;  %1870 = vmatpush3.bf16.msra.mxu0 %v1867_v26 }
  0x59   :  { %1701 = vmatmul.mubr.msk.f32.gmra.mrb[6].mxu0 %vm102_vm1, %v2283_v20  ;;  %1860 = vmatprep.subr.bf16.mxu1 %v1859_v19 }
  0x5a   :  { %1872 = vmatprep.subr.bf16.mxu0 %v1871_v30 }
  0x5c   :  { %1862 = vmatpush3.bf16.msra.mxu1 %v1859_v19  ;;  %1874 = vmatpush3.bf16.msra.mxu0 %v1871_v30 }
  0x5d   :  { %1879 = vmatprep.subr.bf16.mxu1 %v2102_v27  ;;  %1876 = vmatprep.subr.bf16.mxu0 %v1875_v61 }
  0x60   :  { %1878 = vmatpush3.bf16.msra.mxu0 %v1875_v61 }
  0x61   :  { %1885 = vmatprep.subr.bf16.mxu0 %v2102_v27 }
  0xc9   :  { %v694_v0 = vpop.permute.xlu1 %693 }
 0x120   :  { %v1693_v32 = vpop.f32.mrb[0].mxu0 }
 0x121   :  { %v203_v33 = vadd.f32 %v1693_v32, %v1563_v31  ;;  %v197_v34 = vpop.f32.mrb[1].mxu0 }
 0x122   :  { %v198_v37 = vadd.f32 %v1563_v31, %v197_v34 }
 0x123   :  { %v237_v41 = vmax.f32 %v203_v33, 0.0 }
 0x124   :  { %v236_v38 = vmax.f32 %v198_v37, 0.0  ;;  %v1696_v39 = vpop.f32.mrb[2].mxu0 }
 0x125   :  { %v213_v42 = vadd.f32 %v1696_v39, %v1563_v31  ;;  %v207_v43 = vpop.f32.mrb[3].mxu0 }
 0x126   :  { %1719 = vmatprep.mubr.msk.f32.mxu1 %vm259_vm2, %v236_v38  ;;  %v208_v44 = vadd.f32 %v1563_v31, %v207_v43 }
 0x127   :  { %1720 = vmatmul.mubr.msk.f32.vlgmr.msra.gmra.mrb[0].mxu1 %vm259_vm2, %v237_v41  ;;  %v239_v45 = vmax.f32 %v213_v42, 0.0  ;;  %v2379_v41 = vld [vmem:[%s2573_s6] ss:$0 sm:$0xff]  ;;  %v408_v42 = vpop.permute.xlu0 %407  ;;  %s2107_s6 = smov 64  }
 0x128   :  { %v238_v46 = vmax.f32 %v208_v44, 0.0  ;;  %v1699_v47 = vpop.f32.mrb[4].mxu0  ;;  %1881 = vmatpush3.bf16.msra.mxu1 %v2312_v40  ;;  %v444_v43 = vmul.f32 %v2379_v41, %v408_v42 }
 0x129   :  { %v223_v48 = vadd.f32 %v1699_v47, %v1563_v31  ;;  %v217_v49 = vpop.f32.mrb[5].mxu0  ;;  %1882 = vmatprep.subr.bf16.mxu1 %v2102_v27 }
 0x12a   :  { %v218_v50 = vadd.f32 %v1563_v31, %v217_v49  ;;  %1722 = vmatprep.mubr.msk.f32.mxu1 %vm259_vm2, %v238_v46  ;;  %v2382_v46 = vld [vmem:[#allocation9] ss:$0 sm:$0xff] }
 0x12b   :  { %v241_v51 = vmax.f32 %v223_v48, 0.0  ;;  %1723 = vmatmul.mubr.msk.f32.gmra.mrb[2].mxu1 %vm259_vm2, %v239_v45 }
 0x12c   :  { %v240_v52 = vmax.f32 %v218_v50, 0.0  ;;  %v1702_v53 = vpop.f32.mrb[6].mxu0  ;;  %1884 = vmatpush3.bf16.msra.mxu1 %v2343_v3 }
 0x12d   :  { %v233_v54 = vadd.f32 %v1702_v53, %v1563_v31  ;;  %v227_v55 = vpop.f32.mrb[7].mxu0  ;;  %1891 = vmatprep.subr.bf16.mxu1 %v2102_v27 }
 0x12e   :  { %1725 = vmatprep.mubr.msk.f32.mxu1 %vm259_vm2, %v240_v52  ;;  %v228_v56 = vadd.f32 %v1563_v31, %v227_v55 }
 0x12f   :  { %1726 = vmatmul.mubr.msk.f32.gmra.mrb[4].mxu1 %vm259_vm2, %v241_v51  ;;  %v243_v57 = vmax.f32 %v233_v54, 0.0 }
 0x130   :  { %v242_v58 = vmax.f32 %v228_v56, 0.0 }
 0x132   :  { %1728 = vmatprep.mubr.msk.f32.mxu1 %vm259_vm2, %v242_v58 }
 0x133   :  { %1729 = vmatmul.mubr.msk.f32.gmra.mrb[6].mxu1 %vm259_vm2, %v243_v57 }
 0x134   :  { %1767 = vmatprep.mubr.msk.f32.mxu1 %vm2104_vm4, %v2103_v62 }
 0x137   :  { %1768 = vmatmul.mubr.msk.f32.vlgmr.msra.gmra.mrb[8].mxu1 %vm83_vm3, %v605_v6 }
 0x138   :  { %1893 = vmatpush3.bf16.msra.mxu1 %v2312_v40  ;;  %1789 = vmatprep.mubr.msk.f32.mxu1 %vm2104_vm4, %v2103_v62 }
 0x139   :  { %1894 = vmatprep.subr.bf16.mxu1 %v2102_v27 }
 0x13c   :  { %1896 = vmatpush3.bf16.msra.mxu1 %v2343_v3 }
 0x13d   :  { %1903 = vmatprep.subr.bf16.mxu1 %v2102_v27 }
 0x1fa   :  { %v1721_v8 = vpop.f32.mrb[0].mxu1 }
 0x1fb   :  { %v356_v9 = vadd.f32 %v1721_v8, %v1573_v1  ;;  %v350_v10 = vpop.f32.mrb[1].mxu1 }
 0x1fc   :  { %v351_v12 = vadd.f32 %v1573_v1, %v350_v10 }
 0x1fd   :  { %v390_v17 = vmax.f32 %v356_v9, 0.0 }
 0x1fe   :  { %v389_v14 = vmax.f32 %v351_v12, 0.0  ;;  %v1724_v16 = vpop.f32.mrb[2].mxu1 }
 0x1ff   :  { %v366_v19 = vadd.f32 %v1724_v16, %v1573_v1  ;;  %v360_v21 = vpop.f32.mrb[3].mxu1 }
 0x200   :  { %1747 = vmatprep.mubr.msk.f32.mxu0 %vm259_vm2, %v389_v14  ;;  %v361_v22 = vadd.f32 %v1573_v1, %v360_v21 }
 0x201   :  { %1748 = vmatmul.mubr.msk.f32.vlgmr.msra.gmra.mrb[8].mxu0 %vm259_vm2, %v390_v17  ;;  %v392_v23 = vmax.f32 %v366_v19, 0.0 }
 0x202   :  { %v391_v24 = vmax.f32 %v361_v22, 0.0  ;;  %v1727_v25 = vpop.f32.mrb[4].mxu1  ;;  %1887 = vmatpush3.bf16.msra.mxu0 %v2312_v40 }
 0x203   :  { %v376_v26 = vadd.f32 %v1727_v25, %v1573_v1  ;;  %v370_v28 = vpop.f32.mrb[5].mxu1  ;;  %1888 = vmatprep.subr.bf16.mxu0 %v2102_v27 }
 0x204   :  { %v371_v29 = vadd.f32 %v1573_v1, %v370_v28  ;;  %1750 = vmatprep.mubr.msk.f32.mxu0 %vm259_vm2, %v391_v24 }
 0x205   :  { %v394_v30 = vmax.f32 %v376_v26, 0.0  ;;  %1751 = vmatmul.mubr.msk.f32.gmra.mrb[10].mxu0 %vm259_vm2, %v392_v23 }
 0x206   :  { %v393_v31 = vmax.f32 %v371_v29, 0.0  ;;  %1890 = vmatpush3.bf16.msra.mxu0 %v2343_v3  ;;  %v1730_v32 = vpop.f32.mrb[6].mxu1 }
 0x207   :  { %1897 = vmatprep.subr.bf16.mxu0 %v2102_v27  ;;  %v386_v33 = vadd.f32 %v1730_v32, %v1573_v1  ;;  %v380_v34 = vpop.f32.mrb[7].mxu1 }
 0x208   :  { %1753 = vmatprep.mubr.msk.f32.mxu0 %vm259_vm2, %v393_v31  ;;  %v381_v35 = vadd.f32 %v1573_v1, %v380_v34 }
 0x209   :  { %1754 = vmatmul.mubr.msk.f32.gmra.mrb[12].mxu0 %vm259_vm2, %v394_v30  ;;  %v396_v36 = vmax.f32 %v386_v33, 0.0 }
 0x20a   :  { %v395_v37 = vmax.f32 %v381_v35, 0.0  ;;  %v680_v38 = vpop.f32.mrb[8].mxu1 }
 0x20b   :  { %v1769_v39 = vpop.f32.mrb[9].mxu1 }
 0x20c   :  { %1756 = vmatprep.mubr.msk.f32.mxu0 %vm259_vm2, %v395_v37 }
 0x20d   :  { %1757 = vmatmul.mubr.msk.f32.gmra.mrb[14].mxu0 %vm259_vm2, %v396_v36 }
 0x20e   :  { %1778 = vmatprep.mubr.msk.f32.mxu0 %vm2104_vm4, %v2103_v62 }
 0x2d4   :  { %v1749_v44 = vpop.f32.mrb[8].mxu0 }
 0x2d5   :  { %v542_v45 = vpop.f32.mrb[9].mxu0 }
 0x2d6   :  { %v543_v47 = vadd.f32 %v542_v45, %v444_v43 }
 0x2d8   :  { %v588_v48 = vadd.f32 %v2382_v46, %v543_v47  ;;  %v2385_v50 = vpop.f32.mrb[10].mxu0 }
 0x2d9   :  { %v2387_v51 = vpop.f32.mrb[11].mxu0 }
 0x2da   :  { %v681_v49 = vadd.f32 %v680_v38, %v588_v48 }
 0x2dc   :  { %1940 = vtanh.f32 %v681_v49  ;;  %v2389_v52 = vpop.f32.mrb[12].mxu0  ;;  %v1593_v57 = vmul.f32 -1.442695, %v681_v49 }
 0x2dd   :  { %v2391_v53 = vpop.f32.mrb[13].mxu0 }
 0x2de   :  { %1942 = vpow2.f32 %v1593_v57 }
 0x2e0   :  { %v2394_v55 = vpop.f32.mrb[14].mxu0 }
 0x2e1   :  { %v2396_v56 = vpop.f32.mrb[15].mxu0 }
 0x2e6   :  { %v1941_v54 = vpop.eup %1940 }
 0x2e7   :  { %698 = vrot.lane.b32.xlu0 %v1941_v54, %s2106_s7 }
 0x2e8   :  { %v1943_v58 = vpop.eup %1942 }
 0x2e9   :  { %v687_v59 = vadd.f32 1.0, %v1943_v58 }
 0x2eb   :  { %1944 = vrcp.f32 %v687_v59 }
 0x2f5   :  { %v1945_v60 = vpop.eup %1944 }
 0x2f6   :  { %v696_v4 = vmul.f32 %v1945_v60, %v694_v0 }
 0x359   :  { %v699_v61 = vpop.permute.xlu0 %698 }
 0x35a   :  { %v701_v63 = vmul.f32 %v1945_v60, %v699_v61 }
 0x35c   :  { %703 = vrot.lane.b32.xlu1 %v701_v63, %s2106_s7 }
 0x3ce   :  { %v704_v6 = vpop.permute.xlu1 %703 }
 0x3cf   :  { %v706_v7 = vadd.f32 %v704_v6, %v696_v4 }
 0x3d1   :  { %1946 = vtanh.f32 %v706_v7 }
 0x3db   :  { %v1947_v1 = vpop.eup %1946 }
 0x3dc   :  { %714 = vrot.lane.b32.xlu0 %v1947_v1, %s2106_s7 }
 0x3e0   :  { %411 = vperm.xlu0 %1938, %v2215_v2  }
 0x44e   :  { %v715_v8 = vpop.permute.xlu0 %714 }
 0x44f   :  { %v717_v9 = vmul.f32 %v1945_v60, %v715_v8 }
 0x451   :  { %719 = vrot.lane.b32.xlu1 %v717_v9, %s2107_s6 }
 0x455   :  { %708 = vrot.lane.b32.xlu1 %v706_v7, %s2108_s22 }
 0x45f   :  { %v412_v16 = vpop.permute.xlu0 %411 }
 0x460   :  { %v445_v17 = vmul.f32 %v2379_v41, %v412_v16 }
 0x462   :  { %v548_v19 = vadd.f32 %v1749_v44, %v445_v17 }
 0x464   :  { %v589_v21 = vadd.f32 %v2382_v46, %v548_v19 }
 0x4c3   :  { %v720_v10 = vpop.permute.xlu1 %719 }
 0x4c4   :  { %722 = vst.msk [vmem:[#allocation2] sm:$0xff] %vm83_vm3, %v720_v10 }
 0x4c7   :  { %v709_v12 = vpop.permute.xlu1 %708 }
 0x4c8   :  { %711 = vst.msk [vmem:[%s2576_s9] sm:$0xff] %vm83_vm3, %v709_v12 }
 0x4cb   :  { %v725_v14 = vld [vmem:[#allocation2] sm:$0xff] }
 0x4cc   :  { %1779 = vmatmul.mubr.msk.f32.vlgmr.msra.gmra.mrb[16].mxu0 %vm83_vm3, %v725_v14 }
 0x4cd   :  { %1899 = vmatpush3.bf16.msra.mxu0 %v2312_v40  ;;  %1800 = vmatprep.mubr.msk.f32.mxu0 %vm2104_vm4, %v2103_v62 }
 0x4ce   :  { %1900 = vmatprep.subr.bf16.mxu0 %v2102_v27 }
 0x4cf   :  { %v810_v2 = vld [vmem:[%s2576_s9] sm:$0xff] }
 0x4d0   :  { %812 = vrot.lane.b32.xlu1 %v810_v2, %s2106_s7 }
 0x4d1   :  { %1902 = vmatpush3.bf16.msra.mxu0 %v2343_v3 }
 0x4d2   :  { %1909 = vmatprep.subr.bf16.mxu0 %v2102_v27 }
 0x542   :  { %v813_v33 = vpop.permute.xlu1 %812 }
 0x59f   :  { %v799_v22 = vpop.f32.mrb[16].mxu0 }
 0x5a0   :  { %v800_v23 = vadd.f32 %v799_v22, %v589_v21  ;;  %v1780_v24 = vpop.f32.mrb[17].mxu0 }
 0x5a2   :  { %1948 = vtanh.f32 %v800_v23  ;;  %v1595_v26 = vmul.f32 -1.442695, %v800_v23 }
 0x5a4   :  { %1950 = vpow2.f32 %v1595_v26 }
 0x5ac   :  { %v1949_v25 = vpop.eup %1948 }
 0x5ad   :  { %817 = vrot.lane.b32.xlu0 %v1949_v25, %s2106_s7 }
 0x5ae   :  { %v1951_v28 = vpop.eup %1950 }
 0x5af   :  { %v806_v29 = vadd.f32 1.0, %v1951_v28 }
 0x5b1   :  { %1952 = vrcp.f32 %v806_v29 }
 0x5bb   :  { %v1953_v30 = vpop.eup %1952 }
 0x5bc   :  { %v815_v34 = vmul.f32 %v1953_v30, %v813_v33 }
 0x61f   :  { %v818_v31 = vpop.permute.xlu0 %817 }
 0x620   :  { %v820_v32 = vmul.f32 %v1953_v30, %v818_v31 }
 0x622   :  { %822 = vrot.lane.b32.xlu0 %v820_v32, %s2106_s7 }
 0x694   :  { %v823_v35 = vpop.permute.xlu0 %822 }
 0x695   :  { %v825_v36 = vadd.f32 %v823_v35, %v815_v34 }
 0x697   :  { %1954 = vtanh.f32 %v825_v36 }
 0x6a1   :  { %v1955_v37 = vpop.eup %1954 }
 0x6a2   :  { %833 = vrot.lane.b32.xlu1 %v1955_v37, %s2106_s7 }
 0x6a6   :  { %415 = vperm.xlu1 %1939, %v2228_v5  }
 0x714   :  { %v834_v38 = vpop.permute.xlu1 %833 }
 0x715   :  { %v836_v39 = vmul.f32 %v1953_v30, %v834_v38 }
 0x717   :  { %838 = vrot.lane.b32.xlu0 %v836_v39, %s2107_s6 }
 0x71b   :  { %827 = vrot.lane.b32.xlu0 %v825_v36, %s2108_s22 }
 0x725   :  { %v416_v45 = vpop.permute.xlu1 %415 }
 0x726   :  { %v446_v47 = vmul.f32 %v2379_v41, %v416_v45 }
 0x728   :  { %v553_v48 = vadd.f32 %v2387_v51, %v446_v47 }
 0x72a   :  { %v590_v49 = vadd.f32 %v2382_v46, %v553_v48 }
 0x789   :  { %v839_v42 = vpop.permute.xlu0 %838 }
 0x78a   :  { %841 = vst.msk [vmem:[#allocation2] sm:$0xff] %vm83_vm3, %v839_v42 }
 0x78d   :  { %v828_v43 = vpop.permute.xlu0 %827 }
 0x78e   :  { %830 = vst.msk [vmem:[%s2576_s9] sm:$0xff] %vm83_vm3, %v828_v43 }
 0x791   :  { %v844_v44 = vld [vmem:[#allocation2] sm:$0xff] }
 0x792   :  { %1790 = vmatmul.mubr.msk.f32.vlgmr.msra.gmra.mrb[10].mxu1 %vm83_vm3, %v844_v44 }
 0x793   :  { %1905 = vmatpush3.bf16.msra.mxu1 %v2312_v40  ;;  %1811 = vmatprep.mubr.msk.f32.mxu1 %vm2104_vm4, %v2103_v62 }
 0x794   :  { %1906 = vmatprep.subr.bf16.mxu1 %v2102_v27 }
 0x795   :  { %v929_v5 = vld [vmem:[%s2576_s9] sm:$0xff] }
 0x796   :  { %931 = vrot.lane.b32.xlu0 %v929_v5, %s2106_s7 }
 0x797   :  { %1908 = vmatpush3.bf16.msra.mxu1 %v2343_v3 }
 0x798   :  { %1915 = vmatprep.subr.bf16.mxu1 %v2102_v27 }
 0x808   :  { %v932_v51 = vpop.permute.xlu0 %931 }
 0x865   :  { %v918_v54 = vpop.f32.mrb[10].mxu1 }
 0x866   :  { %v919_v57 = vadd.f32 %v918_v54, %v590_v49  ;;  %v1791_v58 = vpop.f32.mrb[11].mxu1 }
 0x868   :  { %1956 = vtanh.f32 %v919_v57  ;;  %v1597_v60 = vmul.f32 -1.442695, %v919_v57 }
 0x86a   :  { %1958 = vpow2.f32 %v1597_v60 }
 0x872   :  { %v1957_v59 = vpop.eup %1956 }
 0x873   :  { %936 = vrot.lane.b32.xlu1 %v1957_v59, %s2106_s7 }
 0x874   :  { %v1959_v61 = vpop.eup %1958 }
 0x875   :  { %v925_v63 = vadd.f32 1.0, %v1959_v61 }
 0x877   :  { %1960 = vrcp.f32 %v925_v63 }
 0x881   :  { %v1961_v0 = vpop.eup %1960 }
 0x882   :  { %v934_v7 = vmul.f32 %v1961_v0, %v932_v51 }
 0x8e5   :  { %v937_v4 = vpop.permute.xlu1 %936 }
 0x8e6   :  { %v939_v6 = vmul.f32 %v1961_v0, %v937_v4 }
 0x8e8   :  { %941 = vrot.lane.b32.xlu1 %v939_v6, %s2106_s7 }
 0x95a   :  { %v942_v1 = vpop.permute.xlu1 %941 }
 0x95b   :  { %v944_v8 = vadd.f32 %v942_v1, %v934_v7 }
 0x95d   :  { %1962 = vtanh.f32 %v944_v8 }
 0x967   :  { %v1963_v9 = vpop.eup %1962 }
 0x968   :  { %952 = vrot.lane.b32.xlu0 %v1963_v9, %s2106_s7 }
 0x96c   :  { %419 = vperm.xlu0 %1938, %v2246_v11  }
 0x9da   :  { %v953_v10 = vpop.permute.xlu0 %952 }
 0x9db   :  { %v955_v12 = vmul.f32 %v1961_v0, %v953_v10 }
 0x9dd   :  { %957 = vrot.lane.b32.xlu1 %v955_v12, %s2107_s6 }
 0x9e1   :  { %946 = vrot.lane.b32.xlu1 %v944_v8, %s2108_s22 }
 0x9eb   :  { %v420_v17 = vpop.permute.xlu0 %419 }
 0x9ec   :  { %v447_v19 = vmul.f32 %v2379_v41, %v420_v17 }
 0x9ee   :  { %v558_v21 = vadd.f32 %v2385_v50, %v447_v19 }
 0x9f0   :  { %v591_v22 = vadd.f32 %v2382_v46, %v558_v21 }
 0xa4f   :  { %v958_v14 = vpop.permute.xlu1 %957 }
 0xa50   :  { %960 = vst.msk [vmem:[#allocation2] sm:$0xff] %vm83_vm3, %v958_v14 }
 0xa53   :  { %v947_v2 = vpop.permute.xlu1 %946 }
 0xa54   :  { %949 = vst.msk [vmem:[%s2576_s9] sm:$0xff] %vm83_vm3, %v947_v2 }
 0xa57   :  { %v963_v16 = vld [vmem:[#allocation2] sm:$0xff] }
 0xa58   :  { %1801 = vmatmul.mubr.msk.f32.vlgmr.msra.gmra.mrb[18].mxu0 %vm83_vm3, %v963_v16 }
 0xa59   :  { %1911 = vmatpush3.bf16.msra.mxu0 %v2312_v40  ;;  %1822 = vmatprep.mubr.msk.f32.mxu0 %vm2104_vm4, %v2103_v62 }
 0xa5a   :  { %1912 = vmatprep.subr.bf16.mxu0 %v2102_v27 }
 0xa5b   :  { %v1048_v11 = vld [vmem:[%s2576_s9] sm:$0xff] }
 0xa5c   :  { %1050 = vrot.lane.b32.xlu1 %v1048_v11, %s2106_s7 }
 0xa5d   :  { %1914 = vmatpush3.bf16.msra.mxu0 %v2343_v3 }
 0xa5e   :  { %1921 = vmatprep.subr.bf16.mxu0 %v2102_v27 }
 0xace   :  { %v1051_v50 = vpop.permute.xlu1 %1050 }
 0xb2b   :  { %v1037_v23 = vpop.f32.mrb[18].mxu0 }
 0xb2c   :  { %v1038_v24 = vadd.f32 %v1037_v23, %v591_v22  ;;  %v1802_v25 = vpop.f32.mrb[19].mxu0 }
 0xb2e   :  { %1964 = vtanh.f32 %v1038_v24  ;;  %v1599_v28 = vmul.f32 -1.442695, %v1038_v24 }
 0xb30   :  { %1966 = vpow2.f32 %v1599_v28 }
 0xb38   :  { %v1965_v26 = vpop.eup %1964 }
 0xb39   :  { %1055 = vrot.lane.b32.xlu0 %v1965_v26, %s2106_s7 }
 0xb3a   :  { %v1967_v29 = vpop.eup %1966 }
 0xb3b   :  { %v1044_v30 = vadd.f32 1.0, %v1967_v29 }
 0xb3d   :  { %1968 = vrcp.f32 %v1044_v30 }
 0xb47   :  { %v1969_v31 = vpop.eup %1968 }
 0xb48   :  { %v1053_v34 = vmul.f32 %v1969_v31, %v1051_v50 }
 0xbab   :  { %v1056_v32 = vpop.permute.xlu0 %1055 }
 0xbac   :  { %v1058_v33 = vmul.f32 %v1969_v31, %v1056_v32 }
 0xbae   :  { %1060 = vrot.lane.b32.xlu0 %v1058_v33, %s2106_s7 }
 0xc20   :  { %v1061_v35 = vpop.permute.xlu0 %1060 }
 0xc21   :  { %v1063_v36 = vadd.f32 %v1061_v35, %v1053_v34 }
 0xc23   :  { %1970 = vtanh.f32 %v1063_v36 }
 0xc2d   :  { %v1971_v37 = vpop.eup %1970 }
 0xc2e   :  { %1071 = vrot.lane.b32.xlu1 %v1971_v37, %s2106_s7 }
 0xc32   :  { %423 = vperm.xlu1 %1939, %v2254_v13  }
 0xca0   :  { %v1072_v38 = vpop.permute.xlu1 %1071 }
 0xca1   :  { %v1074_v39 = vmul.f32 %v1969_v31, %v1072_v38 }
 0xca3   :  { %1076 = vrot.lane.b32.xlu0 %v1074_v39, %s2107_s6 }
 0xca7   :  { %1065 = vrot.lane.b32.xlu0 %v1063_v36, %s2108_s22 }
 0xcb1   :  { %v424_v5 = vpop.permute.xlu1 %423 }
 0xcb2   :  { %v448_v45 = vmul.f32 %v2379_v41, %v424_v5 }
 0xcb4   :  { %v563_v47 = vadd.f32 %v2391_v53, %v448_v45 }
 0xcb6   :  { %v592_v48 = vadd.f32 %v2382_v46, %v563_v47 }
 0xd15   :  { %v1077_v42 = vpop.permute.xlu0 %1076 }
 0xd16   :  { %1079 = vst.msk [vmem:[#allocation2] sm:$0xff] %vm83_vm3, %v1077_v42 }
 0xd19   :  { %v1066_v43 = vpop.permute.xlu0 %1065 }
 0xd1a   :  { %1068 = vst.msk [vmem:[%s2576_s9] sm:$0xff] %vm83_vm3, %v1066_v43 }
 0xd1d   :  { %v1082_v44 = vld [vmem:[#allocation2] sm:$0xff] }
 0xd1e   :  { %1812 = vmatmul.mubr.msk.f32.vlgmr.msra.gmra.mrb[12].mxu1 %vm83_vm3, %v1082_v44 }
 0xd1f   :  { %1917 = vmatpush3.bf16.msra.mxu1 %v2312_v40  ;;  %1833 = vmatprep.mubr.msk.f32.mxu1 %vm2104_vm4, %v2103_v62 }
 0xd20   :  { %1918 = vmatprep.subr.bf16.mxu1 %v2102_v27 }
 0xd21   :  { %v1167_v13 = vld [vmem:[%s2576_s9] sm:$0xff] }
 0xd22   :  { %1169 = vrot.lane.b32.xlu0 %v1167_v13, %s2106_s7 }
 0xd23   :  { %1920 = vmatpush3.bf16.msra.mxu1 %v2343_v3 }
 0xd94   :  { %v1170_v53 = vpop.permute.xlu0 %1169 }
 0xdf1   :  { %v1156_v49 = vpop.f32.mrb[12].mxu1 }
 0xdf2   :  { %v1157_v54 = vadd.f32 %v1156_v49, %v592_v48  ;;  %v1813_v57 = vpop.f32.mrb[13].mxu1 }
 0xdf4   :  { %1972 = vtanh.f32 %v1157_v54  ;;  %v1601_v59 = vmul.f32 -1.442695, %v1157_v54 }
 0xdf6   :  { %1974 = vpow2.f32 %v1601_v59 }
 0xdfe   :  { %v1973_v58 = vpop.eup %1972 }
 0xdff   :  { %1174 = vrot.lane.b32.xlu1 %v1973_v58, %s2106_s7 }
 0xe00   :  { %v1975_v60 = vpop.eup %1974 }
 0xe01   :  { %v1163_v61 = vadd.f32 1.0, %v1975_v60 }
 0xe03   :  { %1976 = vrcp.f32 %v1163_v61 }
 0xe0d   :  { %v1977_v63 = vpop.eup %1976 }
 0xe0e   :  { %v1172_v6 = vmul.f32 %v1977_v63, %v1170_v53 }
 0xe71   :  { %v1175_v0 = vpop.permute.xlu1 %1174 }
 0xe72   :  { %v1177_v4 = vmul.f32 %v1977_v63, %v1175_v0 }
 0xe74   :  { %1179 = vrot.lane.b32.xlu1 %v1177_v4, %s2106_s7 }
 0xee6   :  { %v1180_v51 = vpop.permute.xlu1 %1179 }
 0xee7   :  { %v1182_v7 = vadd.f32 %v1180_v51, %v1172_v6 }
 0xee9   :  { %1978 = vtanh.f32 %v1182_v7 }
 0xef3   :  { %v1979_v1 = vpop.eup %1978 }
 0xef4   :  { %1190 = vrot.lane.b32.xlu0 %v1979_v1, %s2106_s7 }
 0xef8   :  { %427 = vperm.xlu0 %1938, %v2263_v15  }
 0xf66   :  { %v1191_v8 = vpop.permute.xlu0 %1190 }
 0xf67   :  { %v1193_v9 = vmul.f32 %v1977_v63, %v1191_v8 }
 0xf69   :  { %1195 = vrot.lane.b32.xlu1 %v1193_v9, %s2107_s6 }
 0xf6d   :  { %1184 = vrot.lane.b32.xlu1 %v1182_v7, %s2108_s22 }
 0xf77   :  { %v428_v2 = vpop.permute.xlu0 %427 }
 0xf78   :  { %v449_v16 = vmul.f32 %v2379_v41, %v428_v2 }
 0xf7a   :  { %v568_v11 = vadd.f32 %v2389_v52, %v449_v16 }
 0xfdb   :  { %v1196_v10 = vpop.permute.xlu1 %1195 }
 0xfdc   :  { %1198 = vst.msk [vmem:[#allocation2] sm:$0xff] %vm83_vm3, %v1196_v10 }
 0xfdf   :  { %v1185_v12 = vpop.permute.xlu1 %1184 }
 0xfe0   :  { %1187 = vst.msk [vmem:[%s2576_s9] sm:$0xff] %vm83_vm3, %v1185_v12 }
 0xfe3   :  { %v1201_v14 = vld [vmem:[#allocation2] sm:$0xff] }
 0xfe4   :  { %1823 = vmatmul.mubr.msk.f32.vlgmr.msra.gmra.mrb[20].mxu0 %vm83_vm3, %v1201_v14 }
 0xfe5   :  { %1923 = vmatpush3.bf16.msra.mxu0 %v2312_v40  ;;  %1844 = vmatprep.mubr.msk.f32.mxu0 %vm2104_vm4, %v2103_v62  ;;  %v593_v40 = vadd.f32 %v2382_v46, %v568_v11 }
 0xfe6   :  { %1924 = vmatprep.subr.bf16.mxu0 %v2102_v27 }
 0xfe7   :  { %v1286_v15 = vld [vmem:[%s2576_s9] sm:$0xff] }
 0xfe8   :  { %1288 = vrot.lane.b32.xlu1 %v1286_v15, %s2106_s7 }
 0xfe9   :  { %1926 = vmatpush3.bf16.msra.mxu0 %v2343_v3 }
0x105a   :  { %v1289_v52 = vpop.permute.xlu1 %1288 }
0x10b7   :  { %v1275_v17 = vpop.f32.mrb[20].mxu0 }
0x10b8   :  { %v1276_v19 = vadd.f32 %v1275_v17, %v593_v40  ;;  %v1824_v62 = vpop.f32.mrb[21].mxu0 }
0x10ba   :  { %1980 = vtanh.f32 %v1276_v19  ;;  %v1603_v21 = vmul.f32 -1.442695, %v1276_v19 }
0x10bc   :  { %1982 = vpow2.f32 %v1603_v21 }
0x10c4   :  { %v1981_v27 = vpop.eup %1980 }
0x10c5   :  { %1293 = vrot.lane.b32.xlu0 %v1981_v27, %s2106_s7 }
0x10c6   :  { %v1983_v22 = vpop.eup %1982 }
0x10c7   :  { %v1282_v23 = vadd.f32 1.0, %v1983_v22 }
0x10c9   :  { %1984 = vrcp.f32 %v1282_v23 }
0x10d3   :  { %v1985_v3 = vpop.eup %1984 }
0x10d4   :  { %v1291_v26 = vmul.f32 %v1985_v3, %v1289_v52 }
0x1137   :  { %v1294_v24 = vpop.permute.xlu0 %1293 }
0x1138   :  { %v1296_v25 = vmul.f32 %v1985_v3, %v1294_v24 }
0x113a   :  { %1298 = vrot.lane.b32.xlu0 %v1296_v25, %s2106_s7 }
0x11ac   :  { %v1299_v28 = vpop.permute.xlu0 %1298 }
0x11ad   :  { %v1301_v29 = vadd.f32 %v1299_v28, %v1291_v26 }
0x11af   :  { %1986 = vtanh.f32 %v1301_v29 }
0x11b9   :  { %v1987_v30 = vpop.eup %1986 }
0x11ba   :  { %1309 = vrot.lane.b32.xlu1 %v1987_v30, %s2106_s7 }
0x11be   :  { %431 = vperm.xlu1 %1939, %v2276_v18  }
0x122c   :  { %v1310_v31 = vpop.permute.xlu1 %1309 }
0x122d   :  { %v1312_v32 = vmul.f32 %v1985_v3, %v1310_v31 }
0x122f   :  { %1314 = vrot.lane.b32.xlu0 %v1312_v32, %s2107_s6 }
0x1233   :  { %1303 = vrot.lane.b32.xlu0 %v1301_v29, %s2108_s22 }
0x123d   :  { %v432_v35 = vpop.permute.xlu1 %431 }
0x123e   :  { %v450_v36 = vmul.f32 %v2379_v41, %v432_v35 }
0x1240   :  { %v573_v37 = vadd.f32 %v2396_v56, %v450_v36 }
0x1242   :  { %v594_v38 = vadd.f32 %v2382_v46, %v573_v37 }
0x12a1   :  { %v1315_v33 = vpop.permute.xlu0 %1314 }
0x12a2   :  { %1317 = vst.msk [vmem:[#allocation2] sm:$0xff] %vm83_vm3, %v1315_v33 }
0x12a5   :  { %v1304_v50 = vpop.permute.xlu0 %1303 }
0x12a6   :  { %1306 = vst.msk [vmem:[%s2576_s9] sm:$0xff] %vm83_vm3, %v1304_v50 }
0x12a9   :  { %v1320_v34 = vld [vmem:[#allocation2] sm:$0xff] }
0x12aa   :  { %1834 = vmatmul.mubr.msk.f32.vlgmr.msra.gmra.mrb[14].mxu1 %vm83_vm3, %v1320_v34 }
0x12ad   :  { %v1405_v18 = vld [vmem:[%s2576_s9] sm:$0xff] }
0x12ae   :  { %1407 = vrot.lane.b32.xlu0 %v1405_v18, %s2106_s7 }
0x1320   :  { %v1408_v56 = vpop.permute.xlu0 %1407 }
0x137d   :  { %v1394_v39 = vpop.f32.mrb[14].mxu1 }
0x137e   :  { %v1395_v42 = vadd.f32 %v1394_v39, %v594_v38  ;;  %v1835_v43 = vpop.f32.mrb[15].mxu1 }
0x1380   :  { %1988 = vtanh.f32 %v1395_v42  ;;  %v1605_v13 = vmul.f32 -1.442695, %v1395_v42 }
0x1382   :  { %1990 = vpow2.f32 %v1605_v13 }
0x138a   :  { %v1989_v44 = vpop.eup %1988 }
0x138b   :  { %1412 = vrot.lane.b32.xlu1 %v1989_v44, %s2106_s7 }
0x138c   :  { %v1991_v5 = vpop.eup %1990 }
0x138d   :  { %v1401_v45 = vadd.f32 1.0, %v1991_v5 }
0x138f   :  { %1992 = vrcp.f32 %v1401_v45 }
0x1399   :  { %v1993_v47 = vpop.eup %1992 }
0x139a   :  { %v1410_v54 = vmul.f32 %v1993_v47, %v1408_v56 }
0x13fd   :  { %v1413_v48 = vpop.permute.xlu1 %1412 }
0x13fe   :  { %v1415_v49 = vmul.f32 %v1993_v47, %v1413_v48 }
0x1400   :  { %1417 = vrot.lane.b32.xlu1 %v1415_v49, %s2106_s7 }
0x1472   :  { %v1418_v57 = vpop.permute.xlu1 %1417 }
0x1473   :  { %v1420_v58 = vadd.f32 %v1418_v57, %v1410_v54 }
0x1475   :  { %1994 = vtanh.f32 %v1420_v58 }
0x147f   :  { %v1995_v59 = vpop.eup %1994 }
0x1480   :  { %1428 = vrot.lane.b32.xlu0 %v1995_v59, %s2106_s7 }
0x1484   :  { %435 = vperm.xlu0 %1938, %v2283_v20  }
0x14f2   :  { %v1429_v60 = vpop.permute.xlu0 %1428 }
0x14f3   :  { %v1431_v61 = vmul.f32 %v1993_v47, %v1429_v60 }
0x14f5   :  { %1433 = vrot.lane.b32.xlu1 %v1431_v61, %s2107_s6 }
0x14f9   :  { %1422 = vrot.lane.b32.xlu1 %v1420_v58, %s2108_s22 }
0x1503   :  { %v436_v53 = vpop.permute.xlu0 %435 }
0x1504   :  { %v451_v6 = vmul.f32 %v2379_v41, %v436_v53 }
0x1506   :  { %v578_v51 = vadd.f32 %v2394_v55, %v451_v6 }
0x1508   :  { %v595_v7 = vadd.f32 %v2382_v46, %v578_v51 }
0x1567   :  { %v1434_v63 = vpop.permute.xlu1 %1433 }
0x1568   :  { %1436 = vst.msk [vmem:[#allocation2] sm:$0xff] %vm83_vm3, %v1434_v63 }
0x156b   :  { %v1423_v0 = vpop.permute.xlu1 %1422 }
0x156c   :  { %1425 = vst.msk [vmem:[%s2576_s9] sm:$0xff] %vm83_vm3, %v1423_v0 }
0x156f   :  { %v1439_v4 = vld [vmem:[#allocation2] sm:$0xff] }
0x1570   :  { %1845 = vmatmul.mubr.msk.f32.vlgmr.msra.gmra.mrb[22].mxu0 %vm83_vm3, %v1439_v4 }
0x1573   :  { %v1524_v20 = vld [vmem:[%s2576_s9] sm:$0xff] }
0x1574   :  { %1526 = vrot.lane.b32.xlu1 %v1524_v20, %s2106_s7 }
0x15e6   :  { %v1527_v41 = vpop.permute.xlu1 %1526 }
0x1643   :  { %v1513_v1 = vpop.f32.mrb[22].mxu0 }
0x1644   :  { %v1514_v8 = vadd.f32 %v1513_v1, %v595_v7  ;;  %v1846_v9 = vpop.f32.mrb[23].mxu0 }
0x1646   :  { %1996 = vtanh.f32 %v1514_v8  ;;  %v1607_v12 = vmul.f32 -1.442695, %v1514_v8 }
0x1648   :  { %1998 = vpow2.f32 %v1607_v12 }
0x1650   :  { %v1997_v10 = vpop.eup %1996 }
0x1651   :  { %1531 = vrot.lane.b32.xlu0 %v1997_v10, %s2106_s7 }
0x1652   :  { %v1999_v14 = vpop.eup %1998 }
0x1653   :  { %v1520_v15 = vadd.f32 1.0, %v1999_v14 }
0x1655   :  { %2000 = vrcp.f32 %v1520_v15 }
0x165f   :  { %v2001_v2 = vpop.eup %2000 }
0x1660   :  { %v1529_v55 = vmul.f32 %v2001_v2, %v1527_v41 }
0x16c3   :  { %v1532_v16 = vpop.permute.xlu0 %1531 }
0x16c4   :  { %v1534_v11 = vmul.f32 %v2001_v2, %v1532_v16 }
0x16c6   :  { %1536 = vrot.lane.b32.xlu0 %v1534_v11, %s2106_s7 }
0x1738   :  { %v1537_v46 = vpop.permute.xlu0 %1536 }
0x1739   :  { %v1539_v40 = vadd.f32 %v1537_v46, %v1529_v55 }
0x173b   :  { %2002 = vtanh.f32 %v1539_v40  ;;  %1541 = vrot.lane.b32.xlu0 %v1539_v40, %s2108_s22 }
0x1745   :  { %v2003_v17 = vpop.eup %2002 }
0x1746   :  { %1547 = vrot.lane.b32.xlu1 %v2003_v17, %s2106_s7 }
0x17ad   :  { %v1542_v19 = vpop.permute.xlu0 %1541 }
0x17ae   :  { %1544 = vst.msk [vmem:[%s2576_s9] sm:$0xff] %vm83_vm3, %v1542_v19 }
0x17b8   :  { %v1548_v62 = vpop.permute.xlu1 %1547 }
0x17b9   :  { %v1550_v27 = vmul.f32 %v2001_v2, %v1548_v62 }
0x17bb   :  { %1552 = vrot.lane.b32.xlu1 %v1550_v27, %s2107_s6 }
0x182d   :  { %v1553_v21 = vpop.permute.xlu1 %1552 }
0x182e   :  { %1555 = vst.msk [vmem:[#allocation2] sm:$0xff] %vm83_vm3, %v1553_v21 }
0x182f   :  { %1560 = vsyncpa [#allocation5], 1 }
0x1830   :  { %1561 = vsyncpa [#allocation7], 1 }
0x1831   :  { %1562 = vsyncpa [#allocation10], 1 }

</bundles_post_ra>
